<compile_context>
chip_gen: v6e
topology: v6e:2x2x1
jax: 0.10.0
libtpu: 0.0.40
codegen_flags: <defaults>
</compile_context>

<pallas_src>
import functools
import math

import jax
import jax.numpy as jnp
from jax import lax
from jax.experimental import pallas as pl
from jax.experimental.pallas import tpu as pltpu


# ----------------------------- in-kernel helpers ----------------------------

def _layernorm(x, gamma, beta, eps):
    mu = jnp.mean(x, axis=-1, keepdims=True)
    var = jnp.mean((x - mu) ** 2, axis=-1, keepdims=True)
    return (x - mu) * lax.rsqrt(var + eps) * gamma + beta


def _gelu(x):
    # TODO(synk): HF BERT uses erf-GELU; tanh approximation used here (erf has no
    # guaranteed Mosaic lowering). Logits drift slightly from the PyTorch reference.
    c = math.sqrt(2.0 / math.pi)
    return 0.5 * x * (1.0 + jnp.tanh(c * (x + 0.044715 * x * x * x)))


# ----------------------------- Pallas kernels ------------------------------

def _embed_ln_kernel(we_ref, pe_ref, te_ref, g_ref, b_ref, o_ref, *, eps):
    # one batch element per grid step: [S, H]
    x = we_ref[0].astype(jnp.float32) + pe_ref[...] + te_ref[...]
    o_ref[0] = _layernorm(x, g_ref[...], b_ref[...], eps).astype(o_ref.dtype)


def embed(input_ids, params, eps=1e-12):
    """word/pos/type embedding sum + LayerNorm.  Gather stays in plain JAX."""
    B, S = input_ids.shape
    H = params["word_emb"].shape[1]
    we = params["word_emb"][input_ids]          # [B, S, H]  (plain-JAX gather glue)
    pe = params["pos_emb"][:S]                  # [S, H]
    te = params["type_emb"][0:1]                # [1, H]  (token_type_ids == 0, as in the spec)
    return pl.pallas_call(
        functools.partial(_embed_ln_kernel, eps=eps),
        out_shape=jax.ShapeDtypeStruct((B, S, H), jnp.float32),
        grid=(B,),
        in_specs=[
            pl.BlockSpec((1, S, H), lambda b: (b, 0, 0)),
            pl.BlockSpec((S, H), lambda b: (0, 0)),
            pl.BlockSpec((1, H), lambda b: (0, 0)),
            pl.BlockSpec((1, H), lambda b: (0, 0)),
            pl.BlockSpec((1, H), lambda b: (0, 0)),
        ],
        out_specs=pl.BlockSpec((1, S, H), lambda b: (b, 0, 0)),
        compiler_params=pltpu.CompilerParams(dimension_semantics=("parallel",)),
    )(we, pe, te,
      params["emb_ln_g"].reshape(1, H), params["emb_ln_b"].reshape(1, H))


def _bert_layer_kernel(x_ref, mask_ref,
                       wqkv_ref, bqkv_ref, wo_ref, bo_ref,
                       ln1_g_ref, ln1_b_ref,
                       w1_ref, b1_ref, w2_ref, b2_ref,
                       ln2_g_ref, ln2_b_ref,
                       out_ref, pooled_ref,
                       *, num_heads, scale, eps):
    x = x_ref[0].astype(jnp.float32)                 # [S, H]
    H = x.shape[-1]
    Dh = H // num_heads
    mask = mask_ref[0]                               # [1, S] additive mask (f32)

    # ---- fused QKV projection: one bf16 MXU matmul, f32 accumulation ----
    qkv = jnp.dot(x.astype(jnp.bfloat16), wqkv_ref[...],
                  preferred_element_type=jnp.float32) + bqkv_ref[...]
    q, k, v = qkv[:, 0:H], qkv[:, H:2 * H], qkv[:, 2 * H:3 * H]

    # ---- attention: all heads of this batch element in one grid step ----
    ctx_parts = []
    for h in range(num_heads):                       # static unroll over heads
        sl = slice(h * Dh, (h + 1) * Dh)
        qh = q[:, sl].astype(jnp.bfloat16)
        kh = k[:, sl].astype(jnp.bfloat16)
        vh = v[:, sl].astype(jnp.bfloat16)
        # contract Dh of both operands -> no XLU transpose of K
        s = lax.dot_general(qh, kh, (((1,), (1,)), ((), ())),
                            preferred_element_type=jnp.float32) * scale
        s = s + mask
        s = s - jnp.max(s, axis=-1, keepdims=True)
        p = jnp.exp(s)
        p = p * pl.reciprocal(jnp.sum(p, axis=-1, keepdims=True), approx=True)
        ctx_parts.append(jnp.dot(p.astype(jnp.bfloat16), vh,
                                 preferred_element_type=jnp.float32))
    ctx = jnp.concatenate(ctx_parts, axis=-1)        # [S, H]

    # ---- output projection + residual + LayerNorm1 (fused) ----
    attn_out = jnp.dot(ctx.astype(jnp.bfloat16), wo_ref[...],
                       preferred_element_type=jnp.float32) + bo_ref[...]
    x1 = _layernorm(attn_out + x, ln1_g_ref[...], ln1_b_ref[...], eps)

    # ---- FFN (GELU fused) + residual + LayerNorm2 (fused) ----
    hmid = jnp.dot(x1.astype(jnp.bfloat16), w1_ref[...],
                   preferred_element_type=jnp.float32) + b1_ref[...]
    hmid = _gelu(hmid)
    ffn = jnp.dot(hmid.astype(jnp.bfloat16), w2_ref[...],
                  preferred_element_type=jnp.float32) + b2_ref[...]
    y = _layernorm(ffn + x1, ln2_g_ref[...], ln2_b_ref[...], eps)

    out_ref[0] = y.astype(out_ref.dtype)

    # ---- CLS / mean-pool epilogue (only the last layer's output is consumed
    #      by the classifier; a few VPU/XLU ops per step, negligible) ----
    cls_emb = y[0:1, :]                              # [1, H]
    avg_emb = jnp.mean(y, axis=0, keepdims=True)     # [1, H] (mean over ALL S, like torch.mean)
    diff = jnp.abs(cls_emb - avg_emb)
    mul = cls_emb * avg_emb
    pooled_ref[0] = jnp.concatenate([diff, mul], axis=-1).astype(pooled_ref.dtype)


def bert_layer(x, mask_add, p, num_heads, eps=1e-12):
    """Whole transformer layer as ONE pallas_call, gridded over batch."""
    B, S, H = x.shape
    inter = p["w1"].shape[1]
    scale = 1.0 / math.sqrt(H // num_heads)

    def full2d(r, c):
        return pl.BlockSpec((r, c), lambda b: (0, 0))

    out, pooled = pl.pallas_call(
        functools.partial(_bert_layer_kernel, num_heads=num_heads,
                          scale=scale, eps=eps),
        out_shape=(jax.ShapeDtypeStruct((B, S, H), jnp.float32),
                   jax.ShapeDtypeStruct((B, 1, 2 * H), jnp.float32)),
        grid=(B,),
        in_specs=[
            pl.BlockSpec((1, S, H), lambda b: (b, 0, 0)),        # x
            pl.BlockSpec((1, 1, S), lambda b: (b, 0, 0)),        # additive mask
            full2d(H, 3 * H), full2d(1, 3 * H),                  # wqkv, bqkv
            full2d(H, H), full2d(1, H),                          # wo, bo
            full2d(1, H), full2d(1, H),                          # ln1 gamma/beta
            full2d(H, inter), full2d(1, inter),                  # w1, b1
            full2d(inter, H), full2d(1, H),                      # w2, b2
            full2d(1, H), full2d(1, H),                          # ln2 gamma/beta
        ],
        out_specs=(pl.BlockSpec((1, S, H), lambda b: (b, 0, 0)),
                   pl.BlockSpec((1, 1, 2 * H), lambda b: (b, 0, 0))),
        compiler_params=pltpu.CompilerParams(
            dimension_semantics=("parallel",)),
    )(x, mask_add,
      p["wqkv"], p["bqkv"].reshape(1, 3 * H),
      p["wo"], p["bo"].reshape(1, H),
      p["ln1_g"].reshape(1, H), p["ln1_b"].reshape(1, H),
      p["w1"], p["b1"].reshape(1, inter),
      p["w2"], p["b2"].reshape(1, H),
      p["ln2_g"].reshape(1, H), p["ln2_b"].reshape(1, H))
    return out, pooled


def _head_kernel(pooled_ref, w_ref, b_ref, o_ref):
    feats = pooled_ref[0]                            # [1, 2H]
    logits = jnp.dot(feats.astype(jnp.bfloat16), w_ref[...],
                     preferred_element_type=jnp.float32) + b_ref[...]
    o_ref[0] = logits.astype(o_ref.dtype)


def classifier_head(pooled, w, b):
    """pooled: [B, 1, 2H] (from the last layer's epilogue); w: [2H, L]; b: [L]."""
    B = pooled.shape[0]
    H2, L = w.shape
    out = pl.pallas_call(
        _head_kernel,
        out_shape=jax.ShapeDtypeStruct((B, 1, L), jnp.float32),
        grid=(B,),
        in_specs=[
            pl.BlockSpec((1, 1, H2), lambda b: (b, 0, 0)),
            pl.BlockSpec((H2, L), lambda b: (0, 0)),
            pl.BlockSpec((1, L), lambda b: (0, 0)),
        ],
        out_specs=pl.BlockSpec((1, 1, L), lambda b: (b, 0, 0)),
        compiler_params=pltpu.CompilerParams(dimension_semantics=("parallel",)),
    )(pooled, w, b.reshape(1, L))
    return out[:, 0, :]


# ----------------------------- Model wrapper --------------------------------

def inference_model_cve_to_cwe(input_ids, attention_mask, params, num_heads):
    B, S = input_ids.shape
    mask_add = ((1.0 - attention_mask.astype(jnp.float32)) * -10000.0).reshape(B, 1, S)
    x = embed(input_ids, params)
    pooled = None
    for lp in params["layers"]:
        x, pooled = bert_layer(x, mask_add, lp, num_heads)
    # nn.Dropout(0.1) is identity at inference time.
    return classifier_head(pooled, params["cls_w"], params["cls_b"])


# ----------------------------- Parameter init -------------------------------

def init_params(key, vocab, max_pos, H, inter, num_layers, num_labels):
    def nrm(k, shape, dtype=jnp.float32):
        return (0.02 * jax.random.normal(k, shape, dtype=jnp.float32)).astype(dtype)

    k_emb, k_pos, k_typ, k_cls, k_layers = jax.random.split(key, 5)
    params = {
        "word_emb": nrm(k_emb, (vocab, H)),
        "pos_emb": nrm(k_pos, (max_pos, H)),
        "type_emb": nrm(k_typ, (2, H)),
        "emb_ln_g": jnp.ones((H,), jnp.float32),
        "emb_ln_b": jnp.zeros((H,), jnp.float32),
        # matmul weights stored in bf16 (MXU path); LN params / biases stay f32
        "cls_w": nrm(k_cls, (2 * H, num_labels), jnp.bfloat16),
        "cls_b": jnp.zeros((num_labels,), jnp.float32),
        "layers": [],
    }
    for lk in jax.random.split(k_layers, num_layers):
        ks = jax.random.split(lk, 6)
        wq = nrm(ks[0], (H, H))
        wk = nrm(ks[1], (H, H))
        wv = nrm(ks[2], (H, H))
        params["layers"].append({
            "wqkv": jnp.concatenate([wq, wk, wv], axis=1).astype(jnp.bfloat16),
            "bqkv": jnp.zeros((3 * H,), jnp.float32),
            "wo": nrm(ks[3], (H, H), jnp.bfloat16),
            "bo": jnp.zeros((H,), jnp.float32),
            "ln1_g": jnp.ones((H,), jnp.float32),
            "ln1_b": jnp.zeros((H,), jnp.float32),
            "w1": nrm(ks[4], (H, inter), jnp.bfloat16),
            "b1": jnp.zeros((inter,), jnp.float32),
            "w2": nrm(ks[5], (inter, H), jnp.bfloat16),
            "b2": jnp.zeros((H,), jnp.float32),
            "ln2_g": jnp.ones((H,), jnp.float32),
            "ln2_b": jnp.zeros((H,), jnp.float32),
        })
    return params


# --------------------------------- main --------------------------------------

if __name__ == "__main__":
    # Small BERT config: batch=2, seq=8, hidden=32, heads=2, layers=2, ffn=64.
    B, S, H, NUM_HEADS, NUM_LAYERS, INTER = 2, 8, 32, 2, 2, 64
    VOCAB, MAX_POS, NUM_LABELS = 50, 16, 2

    key = jax.random.PRNGKey(0)
    k_par, k_ids = jax.random.split(key)
    params = init_params(k_par, VOCAB, MAX_POS, H, INTER, NUM_LAYERS, NUM_LABELS)

    input_ids = jax.random.randint(k_ids, (B, S), 0, VOCAB, dtype=jnp.int32)
    attention_mask = jnp.concatenate(
        [jnp.ones((B, S - 2), jnp.int32), jnp.zeros((B, 2), jnp.int32)], axis=1)

    run = jax.jit(lambda ids, m: inference_model_cve_to_cwe(ids, m, params, NUM_HEADS))
    logits = jax.block_until_ready(run(input_ids, attention_mask))
    assert logits.shape == (B, NUM_LABELS)
    assert bool(jnp.all(jnp.isfinite(logits)))
    print("KERNEL_OK")
</pallas_src>

<mosaic_0001>
module attributes {stable_mosaic.version = 11 : i64} {
  func.func @_embed_ln_kernel(%arg0: i32, %arg1: memref<1x8x32xf32, #tpu.memory_space<vmem>>, %arg2: memref<8x32xf32, #tpu.memory_space<vmem>>, %arg3: memref<1x32xf32, #tpu.memory_space<vmem>>, %arg4: memref<1x32xf32, #tpu.memory_space<vmem>>, %arg5: memref<1x32xf32, #tpu.memory_space<vmem>>, %arg6: memref<1x8x32xf32, #tpu.memory_space<vmem>>) attributes {dimension_semantics = [#tpu.dimension_semantics<parallel>], iteration_bounds = array<i64: 2>, scalar_prefetch = 0 : i64, scratch_operands = 0 : i64, tpu.core_type = #tpu.core_type<tc>, window_params = [{transform_indices = @transform_0, window_bounds = array<i64: 1, 8, 32>}, {pipeline_mode = #tpu.pipeline_mode<synchronous>, transform_indices = @transform_1, window_bounds = array<i64: 8, 32>}, {pipeline_mode = #tpu.pipeline_mode<synchronous>, transform_indices = @transform_2, window_bounds = array<i64: 1, 32>}, {pipeline_mode = #tpu.pipeline_mode<synchronous>, transform_indices = @transform_3, window_bounds = array<i64: 1, 32>}, {pipeline_mode = #tpu.pipeline_mode<synchronous>, transform_indices = @transform_4, window_bounds = array<i64: 1, 32>}, {transform_indices = @transform_5, window_bounds = array<i64: 1, 8, 32>}]} {
    %c0 = arith.constant 0 : index
    %c0_0 = arith.constant 0 : index
    %c0_1 = arith.constant 0 : index
    %0 = vector.load %arg1[%c0, %c0_0, %c0_1] : memref<1x8x32xf32, #tpu.memory_space<vmem>>, vector<1x8x32xf32>
    %1 = vector.shape_cast %0 : vector<1x8x32xf32> to vector<8x32xf32>
    %c0_2 = arith.constant 0 : index
    %c0_3 = arith.constant 0 : index
    %2 = vector.load %arg2[%c0_2, %c0_3] : memref<8x32xf32, #tpu.memory_space<vmem>>, vector<8x32xf32>
    %3 = arith.addf %1, %2 : vector<8x32xf32>
    %c0_4 = arith.constant 0 : index
    %c0_5 = arith.constant 0 : index
    %4 = vector.load %arg3[%c0_4, %c0_5] : memref<1x32xf32, #tpu.memory_space<vmem>>, vector<1x32xf32>
    %5 = vector.broadcast %4 : vector<1x32xf32> to vector<8x32xf32>
    %6 = arith.addf %3, %5 : vector<8x32xf32>
    %c0_6 = arith.constant 0 : index
    %c0_7 = arith.constant 0 : index
    %7 = vector.load %arg4[%c0_6, %c0_7] : memref<1x32xf32, #tpu.memory_space<vmem>>, vector<1x32xf32>
    %c0_8 = arith.constant 0 : index
    %c0_9 = arith.constant 0 : index
    %8 = vector.load %arg5[%c0_8, %c0_9] : memref<1x32xf32, #tpu.memory_space<vmem>>, vector<1x32xf32>
    %cst = arith.constant dense<0.000000e+00> : vector<8xf32>
    %9 = vector.multi_reduction <add>, %6, %cst [1] : vector<8x32xf32> to vector<8xf32>
    %10 = vector.shape_cast %9 : vector<8xf32> to vector<8x1xf32>
    %cst_10 = arith.constant 3.200000e+01 : f32
    %11 = vector.broadcast %cst_10 : f32 to vector<8x1xf32>
    %12 = arith.divf %10, %11 : vector<8x1xf32>
    %13 = vector.broadcast %12 : vector<8x1xf32> to vector<8x32xf32>
    %14 = arith.subf %6, %13 : vector<8x32xf32>
    %15 = arith.mulf %14, %14 : vector<8x32xf32>
    %cst_11 = arith.constant dense<0.000000e+00> : vector<8xf32>
    %16 = vector.multi_reduction <add>, %15, %cst_11 [1] : vector<8x32xf32> to vector<8xf32>
    %17 = vector.shape_cast %16 : vector<8xf32> to vector<8x1xf32>
    %cst_12 = arith.constant 3.200000e+01 : f32
    %18 = vector.broadcast %cst_12 : f32 to vector<8x1xf32>
    %19 = arith.divf %17, %18 : vector<8x1xf32>
    %20 = vector.broadcast %12 : vector<8x1xf32> to vector<8x32xf32>
    %21 = arith.subf %6, %20 : vector<8x32xf32>
    %cst_13 = arith.constant 9.99999996E-13 : f32
    %22 = vector.broadcast %cst_13 : f32 to vector<8x1xf32>
    %23 = arith.addf %19, %22 : vector<8x1xf32>
    %24 = math.rsqrt %23 : vector<8x1xf32>
    %25 = vector.broadcast %24 : vector<8x1xf32> to vector<8x32xf32>
    %26 = arith.mulf %21, %25 : vector<8x32xf32>
    %27 = vector.broadcast %7 : vector<1x32xf32> to vector<8x32xf32>
    %28 = arith.mulf %26, %27 : vector<8x32xf32>
    %29 = vector.broadcast %8 : vector<1x32xf32> to vector<8x32xf32>
    %30 = arith.addf %28, %29 : vector<8x32xf32>
    %c0_14 = arith.constant 0 : index
    %c0_15 = arith.constant 0 : index
    %c0_16 = arith.constant 0 : index
    %31 = vector.load %arg6[%c0_14, %c0_15, %c0_16] : memref<1x8x32xf32, #tpu.memory_space<vmem>>, vector<1x8x32xf32>
    %32 = vector.shape_cast %31 : vector<1x8x32xf32> to vector<8x32xf32>
    %33 = vector.shape_cast %30 : vector<8x32xf32> to vector<1x8x32xf32>
    tpu.vector_store %arg6[%c0_14, %c0_15, %c0_16], %33 {strides = array<i32>} : memref<1x8x32xf32, #tpu.memory_space<vmem>>, vector<1x8x32xf32>,
    return
  }
  func.func @transform_0(%arg0: i32) -> (i32, i32, i32) {
    %c0_i32 = arith.constant 0 : i32
    %c0_i32_0 = arith.constant 0 : i32
    %c0_i32_1 = arith.constant 0 : i32
    return %arg0, %c0_i32, %c0_i32_0 : i32, i32, i32
  }
  func.func @transform_1(%arg0: i32) -> (i32, i32) {
    %c0_i32 = arith.constant 0 : i32
    %c0_i32_0 = arith.constant 0 : i32
    %c0_i32_1 = arith.constant 0 : i32
    return %c0_i32, %c0_i32_0 : i32, i32
  }
  func.func @transform_2(%arg0: i32) -> (i32, i32) {
    %c0_i32 = arith.constant 0 : i32
    %c0_i32_0 = arith.constant 0 : i32
    %c0_i32_1 = arith.constant 0 : i32
    return %c0_i32, %c0_i32_0 : i32, i32
  }
  func.func @transform_3(%arg0: i32) -> (i32, i32) {
    %c0_i32 = arith.constant 0 : i32
    %c0_i32_0 = arith.constant 0 : i32
    %c0_i32_1 = arith.constant 0 : i32
    return %c0_i32, %c0_i32_0 : i32, i32
  }
  func.func @transform_4(%arg0: i32) -> (i32, i32) {
    %c0_i32 = arith.constant 0 : i32
    %c0_i32_0 = arith.constant 0 : i32
    %c0_i32_1 = arith.constant 0 : i32
    return %c0_i32, %c0_i32_0 : i32, i32
  }
  func.func @transform_5(%arg0: i32) -> (i32, i32, i32) {
    %c0_i32 = arith.constant 0 : i32
    %c0_i32_0 = arith.constant 0 : i32
    %c0_i32_1 = arith.constant 0 : i32
    return %arg0, %c0_i32, %c0_i32_0 : i32, i32, i32
  }
}

module attributes {stable_mosaic.version = 11 : i64} {
  func.func @_head_kernel(%arg0: i32, %arg1: memref<1x1x64xf32, #tpu.memory_space<vmem>>, %arg2: memref<64x2xbf16, #tpu.memory_space<vmem>>, %arg3: memref<1x2xf32, #tpu.memory_space<vmem>>, %arg4: memref<1x1x2xf32, #tpu.memory_space<vmem>>) attributes {dimension_semantics = [#tpu.dimension_semantics<parallel>], iteration_bounds = array<i64: 2>, scalar_prefetch = 0 : i64, scratch_operands = 0 : i64, tpu.core_type = #tpu.core_type<tc>, window_params = [{transform_indices = @transform_0, window_bounds = array<i64: 1, 1, 64>}, {pipeline_mode = #tpu.pipeline_mode<synchronous>, transform_indices = @transform_1, window_bounds = array<i64: 64, 2>}, {pipeline_mode = #tpu.pipeline_mode<synchronous>, transform_indices = @transform_2, window_bounds = array<i64: 1, 2>}, {transform_indices = @transform_3, window_bounds = array<i64: 1, 1, 2>}]} {
    %c0 = arith.constant 0 : index
    %c0_0 = arith.constant 0 : index
    %c0_1 = arith.constant 0 : index
    %0 = vector.load %arg1[%c0, %c0_0, %c0_1] : memref<1x1x64xf32, #tpu.memory_space<vmem>>, vector<1x1x64xf32>
    %1 = vector.shape_cast %0 : vector<1x1x64xf32> to vector<1x64xf32>
    %2 = arith.truncf %1 : vector<1x64xf32> to vector<1x64xbf16>
    %c0_2 = arith.constant 0 : index
    %c0_3 = arith.constant 0 : index
    %3 = vector.load %arg2[%c0_2, %c0_3] : memref<64x2xbf16, #tpu.memory_space<vmem>>, vector<64x2xbf16>
    %cst = arith.constant dense<0.000000e+00> : vector<1x2xf32>
    %4 = tpu.matmul %2, %3, %cst {dimension_numbers = #tpu.dot_dimension_numbers<[1], [0], [0], [1], [0, 0, 1, 1], [], []>} : vector<1x64xbf16>, vector<64x2xbf16>, vector<1x2xf32> -> vector<1x2xf32>
    %c0_4 = arith.constant 0 : index
    %c0_5 = arith.constant 0 : index
    %5 = vector.load %arg3[%c0_4, %c0_5] : memref<1x2xf32, #tpu.memory_space<vmem>>, vector<1x2xf32>
    %6 = arith.addf %4, %5 : vector<1x2xf32>
    %c0_6 = arith.constant 0 : index
    %c0_7 = arith.constant 0 : index
    %c0_8 = arith.constant 0 : index
    %7 = vector.load %arg4[%c0_6, %c0_7, %c0_8] : memref<1x1x2xf32, #tpu.memory_space<vmem>>, vector<1x1x2xf32>
    %8 = vector.shape_cast %7 : vector<1x1x2xf32> to vector<1x2xf32>
    %9 = vector.shape_cast %6 : vector<1x2xf32> to vector<1x1x2xf32>
    tpu.vector_store %arg4[%c0_6, %c0_7, %c0_8], %9 {strides = array<i32>} : memref<1x1x2xf32, #tpu.memory_space<vmem>>, vector<1x1x2xf32>,
    return
  }
  func.func @transform_0(%arg0: i32) -> (i32, i32, i32) {
    %c0_i32 = arith.constant 0 : i32
    %c0_i32_0 = arith.constant 0 : i32
    %c0_i32_1 = arith.constant 0 : i32
    return %arg0, %c0_i32, %c0_i32_0 : i32, i32, i32
  }
  func.func @transform_1(%arg0: i32) -> (i32, i32) {
    %c0_i32 = arith.constant 0 : i32
    %c0_i32_0 = arith.constant 0 : i32
    %c0_i32_1 = arith.constant 0 : i32
    return %c0_i32, %c0_i32_0 : i32, i32
  }
  func.func @transform_2(%arg0: i32) -> (i32, i32) {
    %c0_i32 = arith.constant 0 : i32
    %c0_i32_0 = arith.constant 0 : i32
    %c0_i32_1 = arith.constant 0 : i32
    return %c0_i32, %c0_i32_0 : i32, i32
  }
  func.func @transform_3(%arg0: i32) -> (i32, i32, i32) {
    %c0_i32 = arith.constant 0 : i32
    %c0_i32_0 = arith.constant 0 : i32
    %c0_i32_1 = arith.constant 0 : i32
    return %arg0, %c0_i32, %c0_i32_0 : i32, i32, i32
  }
}

module attributes {stable_mosaic.version = 11 : i64} {
  func.func @_bert_layer_kernel(%arg0: i32, %arg1: memref<1x8x32xf32, #tpu.memory_space<vmem>>, %arg2: memref<1x1x8xf32, #tpu.memory_space<vmem>>, %arg3: memref<32x96xbf16, #tpu.memory_space<vmem>>, %arg4: memref<1x96xf32, #tpu.memory_space<vmem>>, %arg5: memref<32x32xbf16, #tpu.memory_space<vmem>>, %arg6: memref<1x32xf32, #tpu.memory_space<vmem>>, %arg7: memref<1x32xf32, #tpu.memory_space<vmem>>, %arg8: memref<1x32xf32, #tpu.memory_space<vmem>>, %arg9: memref<32x64xbf16, #tpu.memory_space<vmem>>, %arg10: memref<1x64xf32, #tpu.memory_space<vmem>>, %arg11: memref<64x32xbf16, #tpu.memory_space<vmem>>, %arg12: memref<1x32xf32, #tpu.memory_space<vmem>>, %arg13: memref<1x32xf32, #tpu.memory_space<vmem>>, %arg14: memref<1x32xf32, #tpu.memory_space<vmem>>, %arg15: memref<1x8x32xf32, #tpu.memory_space<vmem>>, %arg16: memref<1x1x64xf32, #tpu.memory_space<vmem>>) attributes {dimension_semantics = [#tpu.dimension_semantics<parallel>], iteration_bounds = array<i64: 2>, scalar_prefetch = 0 : i64, scratch_operands = 0 : i64, tpu.core_type = #tpu.core_type<tc>, window_params = [{transform_indices = @transform_0, window_bounds = array<i64: 1, 8, 32>}, {transform_indices = @transform_1, window_bounds = array<i64: 1, 1, 8>}, {pipeline_mode = #tpu.pipeline_mode<synchronous>, transform_indices = @transform_2, window_bounds = array<i64: 32, 96>}, {pipeline_mode = #tpu.pipeline_mode<synchronous>, transform_indices = @transform_3, window_bounds = array<i64: 1, 96>}, {pipeline_mode = #tpu.pipeline_mode<synchronous>, transform_indices = @transform_4, window_bounds = array<i64: 32, 32>}, {pipeline_mode = #tpu.pipeline_mode<synchronous>, transform_indices = @transform_5, window_bounds = array<i64: 1, 32>}, {pipeline_mode = #tpu.pipeline_mode<synchronous>, transform_indices = @transform_6, window_bounds = array<i64: 1, 32>}, {pipeline_mode = #tpu.pipeline_mode<synchronous>, transform_indices = @transform_7, window_bounds = array<i64: 1, 32>}, {pipeline_mode = #tpu.pipeline_mode<synchronous>, transform_indices = @transform_8, window_bounds = array<i64: 32, 64>}, {pipeline_mode = #tpu.pipeline_mode<synchronous>, transform_indices = @transform_9, window_bounds = array<i64: 1, 64>}, {pipeline_mode = #tpu.pipeline_mode<synchronous>, transform_indices = @transform_10, window_bounds = array<i64: 64, 32>}, {pipeline_mode = #tpu.pipeline_mode<synchronous>, transform_indices = @transform_11, window_bounds = array<i64: 1, 32>}, {pipeline_mode = #tpu.pipeline_mode<synchronous>, transform_indices = @transform_12, window_bounds = array<i64: 1, 32>}, {pipeline_mode = #tpu.pipeline_mode<synchronous>, transform_indices = @transform_13, window_bounds = array<i64: 1, 32>}, {transform_indices = @transform_14, window_bounds = array<i64: 1, 8, 32>}, {transform_indices = @transform_15, window_bounds = array<i64: 1, 1, 64>}]} {
    %c0 = arith.constant 0 : index
    %c0_0 = arith.constant 0 : index
    %c0_1 = arith.constant 0 : index
    %0 = vector.load %arg1[%c0, %c0_0, %c0_1] : memref<1x8x32xf32, #tpu.memory_space<vmem>>, vector<1x8x32xf32>
    %1 = vector.shape_cast %0 : vector<1x8x32xf32> to vector<8x32xf32>
    %c0_2 = arith.constant 0 : index
    %c0_3 = arith.constant 0 : index
    %c0_4 = arith.constant 0 : index
    %2 = vector.load %arg2[%c0_2, %c0_3, %c0_4] : memref<1x1x8xf32, #tpu.memory_space<vmem>>, vector<1x1x8xf32>
    %3 = vector.shape_cast %2 : vector<1x1x8xf32> to vector<1x8xf32>
    %4 = arith.truncf %1 : vector<8x32xf32> to vector<8x32xbf16>
    %c0_5 = arith.constant 0 : index
    %c0_6 = arith.constant 0 : index
    %5 = vector.load %arg3[%c0_5, %c0_6] : memref<32x96xbf16, #tpu.memory_space<vmem>>, vector<32x96xbf16>
    %cst = arith.constant dense<0.000000e+00> : vector<8x96xf32>
    %6 = tpu.matmul %4, %5, %cst {dimension_numbers = #tpu.dot_dimension_numbers<[1], [0], [0], [1], [0, 0, 1, 1], [], []>} : vector<8x32xbf16>, vector<32x96xbf16>, vector<8x96xf32> -> vector<8x96xf32>
    %c0_7 = arith.constant 0 : index
    %c0_8 = arith.constant 0 : index
    %7 = vector.load %arg4[%c0_7, %c0_8] : memref<1x96xf32, #tpu.memory_space<vmem>>, vector<1x96xf32>
    %8 = vector.broadcast %7 : vector<1x96xf32> to vector<8x96xf32>
    %9 = arith.addf %6, %8 : vector<8x96xf32>
    %10 = vector.extract_strided_slice %9 {offsets = [0, 0], sizes = [8, 32], strides = [1, 1]} : vector<8x96xf32> to vector<8x32xf32>
    %11 = vector.extract_strided_slice %9 {offsets = [0, 32], sizes = [8, 32], strides = [1, 1]} : vector<8x96xf32> to vector<8x32xf32>
    %12 = vector.extract_strided_slice %9 {offsets = [0, 64], sizes = [8, 32], strides = [1, 1]} : vector<8x96xf32> to vector<8x32xf32>
    %13 = vector.extract_strided_slice %10 {offsets = [0, 0], sizes = [8, 16], strides = [1, 1]} : vector<8x32xf32> to vector<8x16xf32>
    %14 = arith.truncf %13 : vector<8x16xf32> to vector<8x16xbf16>
    %15 = vector.extract_strided_slice %11 {offsets = [0, 0], sizes = [8, 16], strides = [1, 1]} : vector<8x32xf32> to vector<8x16xf32>
    %16 = arith.truncf %15 : vector<8x16xf32> to vector<8x16xbf16>
    %17 = vector.extract_strided_slice %12 {offsets = [0, 0], sizes = [8, 16], strides = [1, 1]} : vector<8x32xf32> to vector<8x16xf32>
    %18 = arith.truncf %17 : vector<8x16xf32> to vector<8x16xbf16>
    %cst_9 = arith.constant dense<0.000000e+00> : vector<8x8xf32>
    %19 = tpu.matmul %14, %16, %cst_9 {dimension_numbers = #tpu.dot_dimension_numbers<[1], [1], [0], [0], [0, 0, 1, 0], [], []>} : vector<8x16xbf16>, vector<8x16xbf16>, vector<8x8xf32> -> vector<8x8xf32>
    %cst_10 = arith.constant 2.500000e-01 : f32
    %20 = vector.broadcast %cst_10 : f32 to vector<8x8xf32>
    %21 = arith.mulf %19, %20 : vector<8x8xf32>
    %22 = vector.broadcast %3 : vector<1x8xf32> to vector<8x8xf32>
    %23 = arith.addf %21, %22 : vector<8x8xf32>
    %cst_11 = arith.constant dense<0xFF800000> : vector<8xf32>
    %24 = vector.multi_reduction <maximumf>, %23, %cst_11 [1] : vector<8x8xf32> to vector<8xf32>
    %25 = vector.shape_cast %24 : vector<8xf32> to vector<8x1xf32>
    %26 = vector.broadcast %25 : vector<8x1xf32> to vector<8x8xf32>
    %27 = arith.subf %23, %26 : vector<8x8xf32>
    %28 = math.exp %27 : vector<8x8xf32>
    %cst_12 = arith.constant dense<0.000000e+00> : vector<8xf32>
    %29 = vector.multi_reduction <add>, %28, %cst_12 [1] : vector<8x8xf32> to vector<8xf32>
    %30 = vector.shape_cast %29 : vector<8xf32> to vector<8x1xf32>
    %31 = tpu.reciprocal %30 {approx = true} : vector<8x1xf32> -> vector<8x1xf32>
    %32 = vector.broadcast %31 : vector<8x1xf32> to vector<8x8xf32>
    %33 = arith.mulf %28, %32 : vector<8x8xf32>
    %34 = arith.truncf %33 : vector<8x8xf32> to vector<8x8xbf16>
    %cst_13 = arith.constant dense<0.000000e+00> : vector<8x16xf32>
    %35 = tpu.matmul %34, %18, %cst_13 {dimension_numbers = #tpu.dot_dimension_numbers<[1], [0], [0], [1], [0, 0, 1, 1], [], []>} : vector<8x8xbf16>, vector<8x16xbf16>, vector<8x16xf32> -> vector<8x16xf32>
    %36 = vector.extract_strided_slice %10 {offsets = [0, 16], sizes = [8, 16], strides = [1, 1]} : vector<8x32xf32> to vector<8x16xf32>
    %37 = arith.truncf %36 : vector<8x16xf32> to vector<8x16xbf16>
    %38 = vector.extract_strided_slice %11 {offsets = [0, 16], sizes = [8, 16], strides = [1, 1]} : vector<8x32xf32> to vector<8x16xf32>
    %39 = arith.truncf %38 : vector<8x16xf32> to vector<8x16xbf16>
    %40 = vector.extract_strided_slice %12 {offsets = [0, 16], sizes = [8, 16], strides = [1, 1]} : vector<8x32xf32> to vector<8x16xf32>
    %41 = arith.truncf %40 : vector<8x16xf32> to vector<8x16xbf16>
    %cst_14 = arith.constant dense<0.000000e+00> : vector<8x8xf32>
    %42 = tpu.matmul %37, %39, %cst_14 {dimension_numbers = #tpu.dot_dimension_numbers<[1], [1], [0], [0], [0, 0, 1, 0], [], []>} : vector<8x16xbf16>, vector<8x16xbf16>, vector<8x8xf32> -> vector<8x8xf32>
    %cst_15 = arith.constant 2.500000e-01 : f32
    %43 = vector.broadcast %cst_15 : f32 to vector<8x8xf32>
    %44 = arith.mulf %42, %43 : vector<8x8xf32>
    %45 = vector.broadcast %3 : vector<1x8xf32> to vector<8x8xf32>
    %46 = arith.addf %44, %45 : vector<8x8xf32>
    %cst_16 = arith.constant dense<0xFF800000> : vector<8xf32>
    %47 = vector.multi_reduction <maximumf>, %46, %cst_16 [1] : vector<8x8xf32> to vector<8xf32>
    %48 = vector.shape_cast %47 : vector<8xf32> to vector<8x1xf32>
    %49 = vector.broadcast %48 : vector<8x1xf32> to vector<8x8xf32>
    %50 = arith.subf %46, %49 : vector<8x8xf32>
    %51 = math.exp %50 : vector<8x8xf32>
    %cst_17 = arith.constant dense<0.000000e+00> : vector<8xf32>
    %52 = vector.multi_reduction <add>, %51, %cst_17 [1] : vector<8x8xf32> to vector<8xf32>
    %53 = vector.shape_cast %52 : vector<8xf32> to vector<8x1xf32>
    %54 = tpu.reciprocal %53 {approx = true} : vector<8x1xf32> -> vector<8x1xf32>
    %55 = vector.broadcast %54 : vector<8x1xf32> to vector<8x8xf32>
    %56 = arith.mulf %51, %55 : vector<8x8xf32>
    %57 = arith.truncf %56 : vector<8x8xf32> to vector<8x8xbf16>
    %cst_18 = arith.constant dense<0.000000e+00> : vector<8x16xf32>
    %58 = tpu.matmul %57, %41, %cst_18 {dimension_numbers = #tpu.dot_dimension_numbers<[1], [0], [0], [1], [0, 0, 1, 1], [], []>} : vector<8x8xbf16>, vector<8x16xbf16>, vector<8x16xf32> -> vector<8x16xf32>
    %59 = tpu.concatenate %35, %58 in 1 : vector<8x16xf32>, vector<8x16xf32> -> vector<8x32xf32>
    %60 = arith.truncf %59 : vector<8x32xf32> to vector<8x32xbf16>
    %c0_19 = arith.constant 0 : index
    %c0_20 = arith.constant 0 : index
    %61 = vector.load %arg5[%c0_19, %c0_20] : memref<32x32xbf16, #tpu.memory_space<vmem>>, vector<32x32xbf16>
    %cst_21 = arith.constant dense<0.000000e+00> : vector<8x32xf32>
    %62 = tpu.matmul %60, %61, %cst_21 {dimension_numbers = #tpu.dot_dimension_numbers<[1], [0], [0], [1], [0, 0, 1, 1], [], []>} : vector<8x32xbf16>, vector<32x32xbf16>, vector<8x32xf32> -> vector<8x32xf32>
    %c0_22 = arith.constant 0 : index
    %c0_23 = arith.constant 0 : index
    %63 = vector.load %arg6[%c0_22, %c0_23] : memref<1x32xf32, #tpu.memory_space<vmem>>, vector<1x32xf32>
    %64 = vector.broadcast %63 : vector<1x32xf32> to vector<8x32xf32>
    %65 = arith.addf %62, %64 : vector<8x32xf32>
    %66 = arith.addf %65, %1 : vector<8x32xf32>
    %c0_24 = arith.constant 0 : index
    %c0_25 = arith.constant 0 : index
    %67 = vector.load %arg7[%c0_24, %c0_25] : memref<1x32xf32, #tpu.memory_space<vmem>>, vector<1x32xf32>
    %c0_26 = arith.constant 0 : index
    %c0_27 = arith.constant 0 : index
    %68 = vector.load %arg8[%c0_26, %c0_27] : memref<1x32xf32, #tpu.memory_space<vmem>>, vector<1x32xf32>
    %cst_28 = arith.constant dense<0.000000e+00> : vector<8xf32>
    %69 = vector.multi_reduction <add>, %66, %cst_28 [1] : vector<8x32xf32> to vector<8xf32>
    %70 = vector.shape_cast %69 : vector<8xf32> to vector<8x1xf32>
    %cst_29 = arith.constant 3.200000e+01 : f32
    %71 = vector.broadcast %cst_29 : f32 to vector<8x1xf32>
    %72 = arith.divf %70, %71 : vector<8x1xf32>
    %73 = vector.broadcast %72 : vector<8x1xf32> to vector<8x32xf32>
    %74 = arith.subf %66, %73 : vector<8x32xf32>
    %75 = arith.mulf %74, %74 : vector<8x32xf32>
    %cst_30 = arith.constant dense<0.000000e+00> : vector<8xf32>
    %76 = vector.multi_reduction <add>, %75, %cst_30 [1] : vector<8x32xf32> to vector<8xf32>
    %77 = vector.shape_cast %76 : vector<8xf32> to vector<8x1xf32>
    %cst_31 = arith.constant 3.200000e+01 : f32
    %78 = vector.broadcast %cst_31 : f32 to vector<8x1xf32>
    %79 = arith.divf %77, %78 : vector<8x1xf32>
    %80 = vector.broadcast %72 : vector<8x1xf32> to vector<8x32xf32>
    %81 = arith.subf %66, %80 : vector<8x32xf32>
    %cst_32 = arith.constant 9.99999996E-13 : f32
    %82 = vector.broadcast %cst_32 : f32 to vector<8x1xf32>
    %83 = arith.addf %79, %82 : vector<8x1xf32>
    %84 = math.rsqrt %83 : vector<8x1xf32>
    %85 = vector.broadcast %84 : vector<8x1xf32> to vector<8x32xf32>
    %86 = arith.mulf %81, %85 : vector<8x32xf32>
    %87 = vector.broadcast %67 : vector<1x32xf32> to vector<8x32xf32>
    %88 = arith.mulf %86, %87 : vector<8x32xf32>
    %89 = vector.broadcast %68 : vector<1x32xf32> to vector<8x32xf32>
    %90 = arith.addf %88, %89 : vector<8x32xf32>
    %91 = arith.truncf %90 : vector<8x32xf32> to vector<8x32xbf16>
    %c0_33 = arith.constant 0 : index
    %c0_34 = arith.constant 0 : index
    %92 = vector.load %arg9[%c0_33, %c0_34] : memref<32x64xbf16, #tpu.memory_space<vmem>>, vector<32x64xbf16>
    %cst_35 = arith.constant dense<0.000000e+00> : vector<8x64xf32>
    %93 = tpu.matmul %91, %92, %cst_35 {dimension_numbers = #tpu.dot_dimension_numbers<[1], [0], [0], [1], [0, 0, 1, 1], [], []>} : vector<8x32xbf16>, vector<32x64xbf16>, vector<8x64xf32> -> vector<8x64xf32>
    %c0_36 = arith.constant 0 : index
    %c0_37 = arith.constant 0 : index
    %94 = vector.load %arg10[%c0_36, %c0_37] : memref<1x64xf32, #tpu.memory_space<vmem>>, vector<1x64xf32>
    %95 = vector.broadcast %94 : vector<1x64xf32> to vector<8x64xf32>
    %96 = arith.addf %93, %95 : vector<8x64xf32>
    %cst_38 = arith.constant 5.000000e-01 : f32
    %97 = vector.broadcast %cst_38 : f32 to vector<8x64xf32>
    %98 = arith.mulf %97, %96 : vector<8x64xf32>
    %cst_39 = arith.constant 4.471500e-02 : f32
    %99 = vector.broadcast %cst_39 : f32 to vector<8x64xf32>
    %100 = arith.mulf %99, %96 : vector<8x64xf32>
    %101 = arith.mulf %100, %96 : vector<8x64xf32>
    %102 = arith.mulf %101, %96 : vector<8x64xf32>
    %103 = arith.addf %96, %102 : vector<8x64xf32>
    %cst_40 = arith.constant 0.797884583 : f32
    %104 = vector.broadcast %cst_40 : f32 to vector<8x64xf32>
    %105 = arith.mulf %104, %103 : vector<8x64xf32>
    %106 = math.tanh %105 : vector<8x64xf32>
    %cst_41 = arith.constant 1.000000e+00 : f32
    %107 = vector.broadcast %cst_41 : f32 to vector<8x64xf32>
    %108 = arith.addf %107, %106 : vector<8x64xf32>
    %109 = arith.mulf %98, %108 : vector<8x64xf32>
    %110 = arith.truncf %109 : vector<8x64xf32> to vector<8x64xbf16>
    %c0_42 = arith.constant 0 : index
    %c0_43 = arith.constant 0 : index
    %111 = vector.load %arg11[%c0_42, %c0_43] : memref<64x32xbf16, #tpu.memory_space<vmem>>, vector<64x32xbf16>
    %cst_44 = arith.constant dense<0.000000e+00> : vector<8x32xf32>
    %112 = tpu.matmul %110, %111, %cst_44 {dimension_numbers = #tpu.dot_dimension_numbers<[1], [0], [0], [1], [0, 0, 1, 1], [], []>} : vector<8x64xbf16>, vector<64x32xbf16>, vector<8x32xf32> -> vector<8x32xf32>
    %c0_45 = arith.constant 0 : index
    %c0_46 = arith.constant 0 : index
    %113 = vector.load %arg12[%c0_45, %c0_46] : memref<1x32xf32, #tpu.memory_space<vmem>>, vector<1x32xf32>
    %114 = vector.broadcast %113 : vector<1x32xf32> to vector<8x32xf32>
    %115 = arith.addf %112, %114 : vector<8x32xf32>
    %116 = arith.addf %115, %90 : vector<8x32xf32>
    %c0_47 = arith.constant 0 : index
    %c0_48 = arith.constant 0 : index
    %117 = vector.load %arg13[%c0_47, %c0_48] : memref<1x32xf32, #tpu.memory_space<vmem>>, vector<1x32xf32>
    %c0_49 = arith.constant 0 : index
    %c0_50 = arith.constant 0 : index
    %118 = vector.load %arg14[%c0_49, %c0_50] : memref<1x32xf32, #tpu.memory_space<vmem>>, vector<1x32xf32>
    %cst_51 = arith.constant dense<0.000000e+00> : vector<8xf32>
    %119 = vector.multi_reduction <add>, %116, %cst_51 [1] : vector<8x32xf32> to vector<8xf32>
    %120 = vector.shape_cast %119 : vector<8xf32> to vector<8x1xf32>
    %cst_52 = arith.constant 3.200000e+01 : f32
    %121 = vector.broadcast %cst_52 : f32 to vector<8x1xf32>
    %122 = arith.divf %120, %121 : vector<8x1xf32>
    %123 = vector.broadcast %122 : vector<8x1xf32> to vector<8x32xf32>
    %124 = arith.subf %116, %123 : vector<8x32xf32>
    %125 = arith.mulf %124, %124 : vector<8x32xf32>
    %cst_53 = arith.constant dense<0.000000e+00> : vector<8xf32>
    %126 = vector.multi_reduction <add>, %125, %cst_53 [1] : vector<8x32xf32> to vector<8xf32>
    %127 = vector.shape_cast %126 : vector<8xf32> to vector<8x1xf32>
    %cst_54 = arith.constant 3.200000e+01 : f32
    %128 = vector.broadcast %cst_54 : f32 to vector<8x1xf32>
    %129 = arith.divf %127, %128 : vector<8x1xf32>
    %130 = vector.broadcast %122 : vector<8x1xf32> to vector<8x32xf32>
    %131 = arith.subf %116, %130 : vector<8x32xf32>
    %cst_55 = arith.constant 9.99999996E-13 : f32
    %132 = vector.broadcast %cst_55 : f32 to vector<8x1xf32>
    %133 = arith.addf %129, %132 : vector<8x1xf32>
    %134 = math.rsqrt %133 : vector<8x1xf32>
    %135 = vector.broadcast %134 : vector<8x1xf32> to vector<8x32xf32>
    %136 = arith.mulf %131, %135 : vector<8x32xf32>
    %137 = vector.broadcast %117 : vector<1x32xf32> to vector<8x32xf32>
    %138 = arith.mulf %136, %137 : vector<8x32xf32>
    %139 = vector.broadcast %118 : vector<1x32xf32> to vector<8x32xf32>
    %140 = arith.addf %138, %139 : vector<8x32xf32>
    %c0_56 = arith.constant 0 : index
    %c0_57 = arith.constant 0 : index
    %c0_58 = arith.constant 0 : index
    %141 = vector.load %arg15[%c0_56, %c0_57, %c0_58] : memref<1x8x32xf32, #tpu.memory_space<vmem>>, vector<1x8x32xf32>
    %142 = vector.shape_cast %141 : vector<1x8x32xf32> to vector<8x32xf32>
    %143 = vector.shape_cast %140 : vector<8x32xf32> to vector<1x8x32xf32>
    tpu.vector_store %arg15[%c0_56, %c0_57, %c0_58], %143 {strides = array<i32>} : memref<1x8x32xf32, #tpu.memory_space<vmem>>, vector<1x8x32xf32>,
    %144 = vector.extract_strided_slice %140 {offsets = [0, 0], sizes = [1, 32], strides = [1, 1]} : vector<8x32xf32> to vector<1x32xf32>
    %cst_59 = arith.constant dense<0.000000e+00> : vector<32xf32>
    %145 = vector.multi_reduction <add>, %140, %cst_59 [0] : vector<8x32xf32> to vector<32xf32>
    %146 = vector.shape_cast %145 : vector<32xf32> to vector<1x32xf32>
    %cst_60 = arith.constant 8.000000e+00 : f32
    %147 = vector.broadcast %cst_60 : f32 to vector<1x32xf32>
    %148 = arith.divf %146, %147 : vector<1x32xf32>
    %149 = arith.subf %144, %148 : vector<1x32xf32>
    %150 = math.absf %149 : vector<1x32xf32>
    %151 = arith.mulf %144, %148 : vector<1x32xf32>
    %152 = tpu.concatenate %150, %151 in 1 : vector<1x32xf32>, vector<1x32xf32> -> vector<1x64xf32>
    %c0_61 = arith.constant 0 : index
    %c0_62 = arith.constant 0 : index
    %c0_63 = arith.constant 0 : index
    %153 = vector.load %arg16[%c0_61, %c0_62, %c0_63] : memref<1x1x64xf32, #tpu.memory_space<vmem>>, vector<1x1x64xf32>
    %154 = vector.shape_cast %153 : vector<1x1x64xf32> to vector<1x64xf32>
    %155 = vector.shape_cast %152 : vector<1x64xf32> to vector<1x1x64xf32>
    tpu.vector_store %arg16[%c0_61, %c0_62, %c0_63], %155 {strides = array<i32>} : memref<1x1x64xf32, #tpu.memory_space<vmem>>, vector<1x1x64xf32>,
    return
  }
  func.func @transform_0(%arg0: i32) -> (i32, i32, i32) {
    %c0_i32 = arith.constant 0 : i32
    %c0_i32_0 = arith.constant 0 : i32
    %c0_i32_1 = arith.constant 0 : i32
    return %arg0, %c0_i32, %c0_i32_0 : i32, i32, i32
  }
  func.func @transform_1(%arg0: i32) -> (i32, i32, i32) {
    %c0_i32 = arith.constant 0 : i32
    %c0_i32_0 = arith.constant 0 : i32
    %c0_i32_1 = arith.constant 0 : i32
    return %arg0, %c0_i32, %c0_i32_0 : i32, i32, i32
  }
  func.func @transform_2(%arg0: i32) -> (i32, i32) {
    %c0_i32 = arith.constant 0 : i32
    %c0_i32_0 = arith.constant 0 : i32
    %c0_i32_1 = arith.constant 0 : i32
    return %c0_i32, %c0_i32_0 : i32, i32
  }
  func.func @transform_3(%arg0: i32) -> (i32, i32) {
    %c0_i32 = arith.constant 0 : i32
    %c0_i32_0 = arith.constant 0 : i32
    %c0_i32_1 = arith.constant 0 : i32
    return %c0_i32, %c0_i32_0 : i32, i32
  }
  func.func @transform_4(%arg0: i32) -> (i32, i32) {
    %c0_i32 = arith.constant 0 : i32
    %c0_i32_0 = arith.constant 0 : i32
    %c0_i32_1 = arith.constant 0 : i32
    return %c0_i32, %c0_i32_0 : i32, i32
  }
  func.func @transform_5(%arg0: i32) -> (i32, i32) {
    %c0_i32 = arith.constant 0 : i32
    %c0_i32_0 = arith.constant 0 : i32
    %c0_i32_1 = arith.constant 0 : i32
    return %c0_i32, %c0_i32_0 : i32, i32
  }
  func.func @transform_6(%arg0: i32) -> (i32, i32) {
    %c0_i32 = arith.constant 0 : i32
    %c0_i32_0 = arith.constant 0 : i32
    %c0_i32_1 = arith.constant 0 : i32
    return %c0_i32, %c0_i32_0 : i32, i32
  }
  func.func @transform_7(%arg0: i32) -> (i32, i32) {
    %c0_i32 = arith.constant 0 : i32
    %c0_i32_0 = arith.constant 0 : i32
    %c0_i32_1 = arith.constant 0 : i32
    return %c0_i32, %c0_i32_0 : i32, i32
  }
  func.func @transform_8(%arg0: i32) -> (i32, i32) {
    %c0_i32 = arith.constant 0 : i32
    %c0_i32_0 = arith.constant 0 : i32
    %c0_i32_1 = arith.constant 0 : i32
    return %c0_i32, %c0_i32_0 : i32, i32
  }
  func.func @transform_9(%arg0: i32) -> (i32, i32) {
    %c0_i32 = arith.constant 0 : i32
    %c0_i32_0 = arith.constant 0 : i32
    %c0_i32_1 = arith.constant 0 : i32
    return %c0_i32, %c0_i32_0 : i32, i32
  }
  func.func @transform_10(%arg0: i32) -> (i32, i32) {
    %c0_i32 = arith.constant 0 : i32
    %c0_i32_0 = arith.constant 0 : i32
    %c0_i32_1 = arith.constant 0 : i32
    return %c0_i32, %c0_i32_0 : i32, i32
  }
  func.func @transform_11(%arg0: i32) -> (i32, i32) {
    %c0_i32 = arith.constant 0 : i32
    %c0_i32_0 = arith.constant 0 : i32
    %c0_i32_1 = arith.constant 0 : i32
    return %c0_i32, %c0_i32_0 : i32, i32
  }
  func.func @transform_12(%arg0: i32) -> (i32, i32) {
    %c0_i32 = arith.constant 0 : i32
    %c0_i32_0 = arith.constant 0 : i32
    %c0_i32_1 = arith.constant 0 : i32
    return %c0_i32, %c0_i32_0 : i32, i32
  }
  func.func @transform_13(%arg0: i32) -> (i32, i32) {
    %c0_i32 = arith.constant 0 : i32
    %c0_i32_0 = arith.constant 0 : i32
    %c0_i32_1 = arith.constant 0 : i32
    return %c0_i32, %c0_i32_0 : i32, i32
  }
  func.func @transform_14(%arg0: i32) -> (i32, i32, i32) {
    %c0_i32 = arith.constant 0 : i32
    %c0_i32_0 = arith.constant 0 : i32
    %c0_i32_1 = arith.constant 0 : i32
    return %arg0, %c0_i32, %c0_i32_0 : i32, i32, i32
  }
  func.func @transform_15(%arg0: i32) -> (i32, i32, i32) {
    %c0_i32 = arith.constant 0 : i32
    %c0_i32_0 = arith.constant 0 : i32
    %c0_i32_1 = arith.constant 0 : i32
    return %arg0, %c0_i32, %c0_i32_0 : i32, i32, i32
  }
}

module attributes {stable_mosaic.version = 11 : i64} {
  func.func @_bert_layer_kernel(%arg0: i32, %arg1: memref<1x8x32xf32, #tpu.memory_space<vmem>>, %arg2: memref<1x1x8xf32, #tpu.memory_space<vmem>>, %arg3: memref<32x96xbf16, #tpu.memory_space<vmem>>, %arg4: memref<1x96xf32, #tpu.memory_space<vmem>>, %arg5: memref<32x32xbf16, #tpu.memory_space<vmem>>, %arg6: memref<1x32xf32, #tpu.memory_space<vmem>>, %arg7: memref<1x32xf32, #tpu.memory_space<vmem>>, %arg8: memref<1x32xf32, #tpu.memory_space<vmem>>, %arg9: memref<32x64xbf16, #tpu.memory_space<vmem>>, %arg10: memref<1x64xf32, #tpu.memory_space<vmem>>, %arg11: memref<64x32xbf16, #tpu.memory_space<vmem>>, %arg12: memref<1x32xf32, #tpu.memory_space<vmem>>, %arg13: memref<1x32xf32, #tpu.memory_space<vmem>>, %arg14: memref<1x32xf32, #tpu.memory_space<vmem>>, %arg15: memref<1x8x32xf32, #tpu.memory_space<vmem>>, %arg16: memref<1x1x64xf32, #tpu.memory_space<vmem>>) attributes {dimension_semantics = [#tpu.dimension_semantics<parallel>], iteration_bounds = array<i64: 2>, scalar_prefetch = 0 : i64, scratch_operands = 0 : i64, tpu.core_type = #tpu.core_type<tc>, window_params = [{transform_indices = @transform_0, window_bounds = array<i64: 1, 8, 32>}, {transform_indices = @transform_1, window_bounds = array<i64: 1, 1, 8>}, {pipeline_mode = #tpu.pipeline_mode<synchronous>, transform_indices = @transform_2, window_bounds = array<i64: 32, 96>}, {pipeline_mode = #tpu.pipeline_mode<synchronous>, transform_indices = @transform_3, window_bounds = array<i64: 1, 96>}, {pipeline_mode = #tpu.pipeline_mode<synchronous>, transform_indices = @transform_4, window_bounds = array<i64: 32, 32>}, {pipeline_mode = #tpu.pipeline_mode<synchronous>, transform_indices = @transform_5, window_bounds = array<i64: 1, 32>}, {pipeline_mode = #tpu.pipeline_mode<synchronous>, transform_indices = @transform_6, window_bounds = array<i64: 1, 32>}, {pipeline_mode = #tpu.pipeline_mode<synchronous>, transform_indices = @transform_7, window_bounds = array<i64: 1, 32>}, {pipeline_mode = #tpu.pipeline_mode<synchronous>, transform_indices = @transform_8, window_bounds = array<i64: 32, 64>}, {pipeline_mode = #tpu.pipeline_mode<synchronous>, transform_indices = @transform_9, window_bounds = array<i64: 1, 64>}, {pipeline_mode = #tpu.pipeline_mode<synchronous>, transform_indices = @transform_10, window_bounds = array<i64: 64, 32>}, {pipeline_mode = #tpu.pipeline_mode<synchronous>, transform_indices = @transform_11, window_bounds = array<i64: 1, 32>}, {pipeline_mode = #tpu.pipeline_mode<synchronous>, transform_indices = @transform_12, window_bounds = array<i64: 1, 32>}, {pipeline_mode = #tpu.pipeline_mode<synchronous>, transform_indices = @transform_13, window_bounds = array<i64: 1, 32>}, {transform_indices = @transform_14, window_bounds = array<i64: 1, 8, 32>}, {transform_indices = @transform_15, window_bounds = array<i64: 1, 1, 64>}]} {
    %c0 = arith.constant 0 : index
    %c0_0 = arith.constant 0 : index
    %c0_1 = arith.constant 0 : index
    %0 = vector.load %arg1[%c0, %c0_0, %c0_1] : memref<1x8x32xf32, #tpu.memory_space<vmem>>, vector<1x8x32xf32>
    %1 = vector.shape_cast %0 : vector<1x8x32xf32> to vector<8x32xf32>
    %c0_2 = arith.constant 0 : index
    %c0_3 = arith.constant 0 : index
    %c0_4 = arith.constant 0 : index
    %2 = vector.load %arg2[%c0_2, %c0_3, %c0_4] : memref<1x1x8xf32, #tpu.memory_space<vmem>>, vector<1x1x8xf32>
    %3 = vector.shape_cast %2 : vector<1x1x8xf32> to vector<1x8xf32>
    %4 = arith.truncf %1 : vector<8x32xf32> to vector<8x32xbf16>
    %c0_5 = arith.constant 0 : index
    %c0_6 = arith.constant 0 : index
    %5 = vector.load %arg3[%c0_5, %c0_6] : memref<32x96xbf16, #tpu.memory_space<vmem>>, vector<32x96xbf16>
    %cst = arith.constant dense<0.000000e+00> : vector<8x96xf32>
    %6 = tpu.matmul %4, %5, %cst {dimension_numbers = #tpu.dot_dimension_numbers<[1], [0], [0], [1], [0, 0, 1, 1], [], []>} : vector<8x32xbf16>, vector<32x96xbf16>, vector<8x96xf32> -> vector<8x96xf32>
    %c0_7 = arith.constant 0 : index
    %c0_8 = arith.constant 0 : index
    %7 = vector.load %arg4[%c0_7, %c0_8] : memref<1x96xf32, #tpu.memory_space<vmem>>, vector<1x96xf32>
    %8 = vector.broadcast %7 : vector<1x96xf32> to vector<8x96xf32>
    %9 = arith.addf %6, %8 : vector<8x96xf32>
    %10 = vector.extract_strided_slice %9 {offsets = [0, 0], sizes = [8, 32], strides = [1, 1]} : vector<8x96xf32> to vector<8x32xf32>
    %11 = vector.extract_strided_slice %9 {offsets = [0, 32], sizes = [8, 32], strides = [1, 1]} : vector<8x96xf32> to vector<8x32xf32>
    %12 = vector.extract_strided_slice %9 {offsets = [0, 64], sizes = [8, 32], strides = [1, 1]} : vector<8x96xf32> to vector<8x32xf32>
    %13 = vector.extract_strided_slice %10 {offsets = [0, 0], sizes = [8, 16], strides = [1, 1]} : vector<8x32xf32> to vector<8x16xf32>
    %14 = arith.truncf %13 : vector<8x16xf32> to vector<8x16xbf16>
    %15 = vector.extract_strided_slice %11 {offsets = [0, 0], sizes = [8, 16], strides = [1, 1]} : vector<8x32xf32> to vector<8x16xf32>
    %16 = arith.truncf %15 : vector<8x16xf32> to vector<8x16xbf16>
    %17 = vector.extract_strided_slice %12 {offsets = [0, 0], sizes = [8, 16], strides = [1, 1]} : vector<8x32xf32> to vector<8x16xf32>
    %18 = arith.truncf %17 : vector<8x16xf32> to vector<8x16xbf16>
    %cst_9 = arith.constant dense<0.000000e+00> : vector<8x8xf32>
    %19 = tpu.matmul %14, %16, %cst_9 {dimension_numbers = #tpu.dot_dimension_numbers<[1], [1], [0], [0], [0, 0, 1, 0], [], []>} : vector<8x16xbf16>, vector<8x16xbf16>, vector<8x8xf32> -> vector<8x8xf32>
    %cst_10 = arith.constant 2.500000e-01 : f32
    %20 = vector.broadcast %cst_10 : f32 to vector<8x8xf32>
    %21 = arith.mulf %19, %20 : vector<8x8xf32>
    %22 = vector.broadcast %3 : vector<1x8xf32> to vector<8x8xf32>
    %23 = arith.addf %21, %22 : vector<8x8xf32>
    %cst_11 = arith.constant dense<0xFF800000> : vector<8xf32>
    %24 = vector.multi_reduction <maximumf>, %23, %cst_11 [1] : vector<8x8xf32> to vector<8xf32>
    %25 = vector.shape_cast %24 : vector<8xf32> to vector<8x1xf32>
    %26 = vector.broadcast %25 : vector<8x1xf32> to vector<8x8xf32>
    %27 = arith.subf %23, %26 : vector<8x8xf32>
    %28 = math.exp %27 : vector<8x8xf32>
    %cst_12 = arith.constant dense<0.000000e+00> : vector<8xf32>
    %29 = vector.multi_reduction <add>, %28, %cst_12 [1] : vector<8x8xf32> to vector<8xf32>
    %30 = vector.shape_cast %29 : vector<8xf32> to vector<8x1xf32>
    %31 = tpu.reciprocal %30 {approx = true} : vector<8x1xf32> -> vector<8x1xf32>
    %32 = vector.broadcast %31 : vector<8x1xf32> to vector<8x8xf32>
    %33 = arith.mulf %28, %32 : vector<8x8xf32>
    %34 = arith.truncf %33 : vector<8x8xf32> to vector<8x8xbf16>
    %cst_13 = arith.constant dense<0.000000e+00> : vector<8x16xf32>
    %35 = tpu.matmul %34, %18, %cst_13 {dimension_numbers = #tpu.dot_dimension_numbers<[1], [0], [0], [1], [0, 0, 1, 1], [], []>} : vector<8x8xbf16>, vector<8x16xbf16>, vector<8x16xf32> -> vector<8x16xf32>
    %36 = vector.extract_strided_slice %10 {offsets = [0, 16], sizes = [8, 16], strides = [1, 1]} : vector<8x32xf32> to vector<8x16xf32>
    %37 = arith.truncf %36 : vector<8x16xf32> to vector<8x16xbf16>
    %38 = vector.extract_strided_slice %11 {offsets = [0, 16], sizes = [8, 16], strides = [1, 1]} : vector<8x32xf32> to vector<8x16xf32>
    %39 = arith.truncf %38 : vector<8x16xf32> to vector<8x16xbf16>
    %40 = vector.extract_strided_slice %12 {offsets = [0, 16], sizes = [8, 16], strides = [1, 1]} : vector<8x32xf32> to vector<8x16xf32>
    %41 = arith.truncf %40 : vector<8x16xf32> to vector<8x16xbf16>
    %cst_14 = arith.constant dense<0.000000e+00> : vector<8x8xf32>
    %42 = tpu.matmul %37, %39, %cst_14 {dimension_numbers = #tpu.dot_dimension_numbers<[1], [1], [0], [0], [0, 0, 1, 0], [], []>} : vector<8x16xbf16>, vector<8x16xbf16>, vector<8x8xf32> -> vector<8x8xf32>
    %cst_15 = arith.constant 2.500000e-01 : f32
    %43 = vector.broadcast %cst_15 : f32 to vector<8x8xf32>
    %44 = arith.mulf %42, %43 : vector<8x8xf32>
    %45 = vector.broadcast %3 : vector<1x8xf32> to vector<8x8xf32>
    %46 = arith.addf %44, %45 : vector<8x8xf32>
    %cst_16 = arith.constant dense<0xFF800000> : vector<8xf32>
    %47 = vector.multi_reduction <maximumf>, %46, %cst_16 [1] : vector<8x8xf32> to vector<8xf32>
    %48 = vector.shape_cast %47 : vector<8xf32> to vector<8x1xf32>
    %49 = vector.broadcast %48 : vector<8x1xf32> to vector<8x8xf32>
    %50 = arith.subf %46, %49 : vector<8x8xf32>
    %51 = math.exp %50 : vector<8x8xf32>
    %cst_17 = arith.constant dense<0.000000e+00> : vector<8xf32>
    %52 = vector.multi_reduction <add>, %51, %cst_17 [1] : vector<8x8xf32> to vector<8xf32>
    %53 = vector.shape_cast %52 : vector<8xf32> to vector<8x1xf32>
    %54 = tpu.reciprocal %53 {approx = true} : vector<8x1xf32> -> vector<8x1xf32>
    %55 = vector.broadcast %54 : vector<8x1xf32> to vector<8x8xf32>
    %56 = arith.mulf %51, %55 : vector<8x8xf32>
    %57 = arith.truncf %56 : vector<8x8xf32> to vector<8x8xbf16>
    %cst_18 = arith.constant dense<0.000000e+00> : vector<8x16xf32>
    %58 = tpu.matmul %57, %41, %cst_18 {dimension_numbers = #tpu.dot_dimension_numbers<[1], [0], [0], [1], [0, 0, 1, 1], [], []>} : vector<8x8xbf16>, vector<8x16xbf16>, vector<8x16xf32> -> vector<8x16xf32>
    %59 = tpu.concatenate %35, %58 in 1 : vector<8x16xf32>, vector<8x16xf32> -> vector<8x32xf32>
    %60 = arith.truncf %59 : vector<8x32xf32> to vector<8x32xbf16>
    %c0_19 = arith.constant 0 : index
    %c0_20 = arith.constant 0 : index
    %61 = vector.load %arg5[%c0_19, %c0_20] : memref<32x32xbf16, #tpu.memory_space<vmem>>, vector<32x32xbf16>
    %cst_21 = arith.constant dense<0.000000e+00> : vector<8x32xf32>
    %62 = tpu.matmul %60, %61, %cst_21 {dimension_numbers = #tpu.dot_dimension_numbers<[1], [0], [0], [1], [0, 0, 1, 1], [], []>} : vector<8x32xbf16>, vector<32x32xbf16>, vector<8x32xf32> -> vector<8x32xf32>
    %c0_22 = arith.constant 0 : index
    %c0_23 = arith.constant 0 : index
    %63 = vector.load %arg6[%c0_22, %c0_23] : memref<1x32xf32, #tpu.memory_space<vmem>>, vector<1x32xf32>
    %64 = vector.broadcast %63 : vector<1x32xf32> to vector<8x32xf32>
    %65 = arith.addf %62, %64 : vector<8x32xf32>
    %66 = arith.addf %65, %1 : vector<8x32xf32>
    %c0_24 = arith.constant 0 : index
    %c0_25 = arith.constant 0 : index
    %67 = vector.load %arg7[%c0_24, %c0_25] : memref<1x32xf32, #tpu.memory_space<vmem>>, vector<1x32xf32>
    %c0_26 = arith.constant 0 : index
    %c0_27 = arith.constant 0 : index
    %68 = vector.load %arg8[%c0_26, %c0_27] : memref<1x32xf32, #tpu.memory_space<vmem>>, vector<1x32xf32>
    %cst_28 = arith.constant dense<0.000000e+00> : vector<8xf32>
    %69 = vector.multi_reduction <add>, %66, %cst_28 [1] : vector<8x32xf32> to vector<8xf32>
    %70 = vector.shape_cast %69 : vector<8xf32> to vector<8x1xf32>
    %cst_29 = arith.constant 3.200000e+01 : f32
    %71 = vector.broadcast %cst_29 : f32 to vector<8x1xf32>
    %72 = arith.divf %70, %71 : vector<8x1xf32>
    %73 = vector.broadcast %72 : vector<8x1xf32> to vector<8x32xf32>
    %74 = arith.subf %66, %73 : vector<8x32xf32>
    %75 = arith.mulf %74, %74 : vector<8x32xf32>
    %cst_30 = arith.constant dense<0.000000e+00> : vector<8xf32>
    %76 = vector.multi_reduction <add>, %75, %cst_30 [1] : vector<8x32xf32> to vector<8xf32>
    %77 = vector.shape_cast %76 : vector<8xf32> to vector<8x1xf32>
    %cst_31 = arith.constant 3.200000e+01 : f32
    %78 = vector.broadcast %cst_31 : f32 to vector<8x1xf32>
    %79 = arith.divf %77, %78 : vector<8x1xf32>
    %80 = vector.broadcast %72 : vector<8x1xf32> to vector<8x32xf32>
    %81 = arith.subf %66, %80 : vector<8x32xf32>
    %cst_32 = arith.constant 9.99999996E-13 : f32
    %82 = vector.broadcast %cst_32 : f32 to vector<8x1xf32>
    %83 = arith.addf %79, %82 : vector<8x1xf32>
    %84 = math.rsqrt %83 : vector<8x1xf32>
    %85 = vector.broadcast %84 : vector<8x1xf32> to vector<8x32xf32>
    %86 = arith.mulf %81, %85 : vector<8x32xf32>
    %87 = vector.broadcast %67 : vector<1x32xf32> to vector<8x32xf32>
    %88 = arith.mulf %86, %87 : vector<8x32xf32>
    %89 = vector.broadcast %68 : vector<1x32xf32> to vector<8x32xf32>
    %90 = arith.addf %88, %89 : vector<8x32xf32>
    %91 = arith.truncf %90 : vector<8x32xf32> to vector<8x32xbf16>
    %c0_33 = arith.constant 0 : index
    %c0_34 = arith.constant 0 : index
    %92 = vector.load %arg9[%c0_33, %c0_34] : memref<32x64xbf16, #tpu.memory_space<vmem>>, vector<32x64xbf16>
    %cst_35 = arith.constant dense<0.000000e+00> : vector<8x64xf32>
    %93 = tpu.matmul %91, %92, %cst_35 {dimension_numbers = #tpu.dot_dimension_numbers<[1], [0], [0], [1], [0, 0, 1, 1], [], []>} : vector<8x32xbf16>, vector<32x64xbf16>, vector<8x64xf32> -> vector<8x64xf32>
    %c0_36 = arith.constant 0 : index
    %c0_37 = arith.constant 0 : index
    %94 = vector.load %arg10[%c0_36, %c0_37] : memref<1x64xf32, #tpu.memory_space<vmem>>, vector<1x64xf32>
    %95 = vector.broadcast %94 : vector<1x64xf32> to vector<8x64xf32>
    %96 = arith.addf %93, %95 : vector<8x64xf32>
    %cst_38 = arith.constant 5.000000e-01 : f32
    %97 = vector.broadcast %cst_38 : f32 to vector<8x64xf32>
    %98 = arith.mulf %97, %96 : vector<8x64xf32>
    %cst_39 = arith.constant 4.471500e-02 : f32
    %99 = vector.broadcast %cst_39 : f32 to vector<8x64xf32>
    %100 = arith.mulf %99, %96 : vector<8x64xf32>
    %101 = arith.mulf %100, %96 : vector<8x64xf32>
    %102 = arith.mulf %101, %96 : vector<8x64xf32>
    %103 = arith.addf %96, %102 : vector<8x64xf32>
    %cst_40 = arith.constant 0.797884583 : f32
    %104 = vector.broadcast %cst_40 : f32 to vector<8x64xf32>
    %105 = arith.mulf %104, %103 : vector<8x64xf32>
    %106 = math.tanh %105 : vector<8x64xf32>
    %cst_41 = arith.constant 1.000000e+00 : f32
    %107 = vector.broadcast %cst_41 : f32 to vector<8x64xf32>
    %108 = arith.addf %107, %106 : vector<8x64xf32>
    %109 = arith.mulf %98, %108 : vector<8x64xf32>
    %110 = arith.truncf %109 : vector<8x64xf32> to vector<8x64xbf16>
    %c0_42 = arith.constant 0 : index
    %c0_43 = arith.constant 0 : index
    %111 = vector.load %arg11[%c0_42, %c0_43] : memref<64x32xbf16, #tpu.memory_space<vmem>>, vector<64x32xbf16>
    %cst_44 = arith.constant dense<0.000000e+00> : vector<8x32xf32>
    %112 = tpu.matmul %110, %111, %cst_44 {dimension_numbers = #tpu.dot_dimension_numbers<[1], [0], [0], [1], [0, 0, 1, 1], [], []>} : vector<8x64xbf16>, vector<64x32xbf16>, vector<8x32xf32> -> vector<8x32xf32>
    %c0_45 = arith.constant 0 : index
    %c0_46 = arith.constant 0 : index
    %113 = vector.load %arg12[%c0_45, %c0_46] : memref<1x32xf32, #tpu.memory_space<vmem>>, vector<1x32xf32>
    %114 = vector.broadcast %113 : vector<1x32xf32> to vector<8x32xf32>
    %115 = arith.addf %112, %114 : vector<8x32xf32>
    %116 = arith.addf %115, %90 : vector<8x32xf32>
    %c0_47 = arith.constant 0 : index
    %c0_48 = arith.constant 0 : index
    %117 = vector.load %arg13[%c0_47, %c0_48] : memref<1x32xf32, #tpu.memory_space<vmem>>, vector<1x32xf32>
    %c0_49 = arith.constant 0 : index
    %c0_50 = arith.constant 0 : index
    %118 = vector.load %arg14[%c0_49, %c0_50] : memref<1x32xf32, #tpu.memory_space<vmem>>, vector<1x32xf32>
    %cst_51 = arith.constant dense<0.000000e+00> : vector<8xf32>
    %119 = vector.multi_reduction <add>, %116, %cst_51 [1] : vector<8x32xf32> to vector<8xf32>
    %120 = vector.shape_cast %119 : vector<8xf32> to vector<8x1xf32>
    %cst_52 = arith.constant 3.200000e+01 : f32
    %121 = vector.broadcast %cst_52 : f32 to vector<8x1xf32>
    %122 = arith.divf %120, %121 : vector<8x1xf32>
    %123 = vector.broadcast %122 : vector<8x1xf32> to vector<8x32xf32>
    %124 = arith.subf %116, %123 : vector<8x32xf32>
    %125 = arith.mulf %124, %124 : vector<8x32xf32>
    %cst_53 = arith.constant dense<0.000000e+00> : vector<8xf32>
    %126 = vector.multi_reduction <add>, %125, %cst_53 [1] : vector<8x32xf32> to vector<8xf32>
    %127 = vector.shape_cast %126 : vector<8xf32> to vector<8x1xf32>
    %cst_54 = arith.constant 3.200000e+01 : f32
    %128 = vector.broadcast %cst_54 : f32 to vector<8x1xf32>
    %129 = arith.divf %127, %128 : vector<8x1xf32>
    %130 = vector.broadcast %122 : vector<8x1xf32> to vector<8x32xf32>
    %131 = arith.subf %116, %130 : vector<8x32xf32>
    %cst_55 = arith.constant 9.99999996E-13 : f32
    %132 = vector.broadcast %cst_55 : f32 to vector<8x1xf32>
    %133 = arith.addf %129, %132 : vector<8x1xf32>
    %134 = math.rsqrt %133 : vector<8x1xf32>
    %135 = vector.broadcast %134 : vector<8x1xf32> to vector<8x32xf32>
    %136 = arith.mulf %131, %135 : vector<8x32xf32>
    %137 = vector.broadcast %117 : vector<1x32xf32> to vector<8x32xf32>
    %138 = arith.mulf %136, %137 : vector<8x32xf32>
    %139 = vector.broadcast %118 : vector<1x32xf32> to vector<8x32xf32>
    %140 = arith.addf %138, %139 : vector<8x32xf32>
    %c0_56 = arith.constant 0 : index
    %c0_57 = arith.constant 0 : index
    %c0_58 = arith.constant 0 : index
    %141 = vector.load %arg15[%c0_56, %c0_57, %c0_58] : memref<1x8x32xf32, #tpu.memory_space<vmem>>, vector<1x8x32xf32>
    %142 = vector.shape_cast %141 : vector<1x8x32xf32> to vector<8x32xf32>
    %143 = vector.shape_cast %140 : vector<8x32xf32> to vector<1x8x32xf32>
    tpu.vector_store %arg15[%c0_56, %c0_57, %c0_58], %143 {strides = array<i32>} : memref<1x8x32xf32, #tpu.memory_space<vmem>>, vector<1x8x32xf32>,
    %144 = vector.extract_strided_slice %140 {offsets = [0, 0], sizes = [1, 32], strides = [1, 1]} : vector<8x32xf32> to vector<1x32xf32>
    %cst_59 = arith.constant dense<0.000000e+00> : vector<32xf32>
    %145 = vector.multi_reduction <add>, %140, %cst_59 [0] : vector<8x32xf32> to vector<32xf32>
    %146 = vector.shape_cast %145 : vector<32xf32> to vector<1x32xf32>
    %cst_60 = arith.constant 8.000000e+00 : f32
    %147 = vector.broadcast %cst_60 : f32 to vector<1x32xf32>
    %148 = arith.divf %146, %147 : vector<1x32xf32>
    %149 = arith.subf %144, %148 : vector<1x32xf32>
    %150 = math.absf %149 : vector<1x32xf32>
    %151 = arith.mulf %144, %148 : vector<1x32xf32>
    %152 = tpu.concatenate %150, %151 in 1 : vector<1x32xf32>, vector<1x32xf32> -> vector<1x64xf32>
    %c0_61 = arith.constant 0 : index
    %c0_62 = arith.constant 0 : index
    %c0_63 = arith.constant 0 : index
    %153 = vector.load %arg16[%c0_61, %c0_62, %c0_63] : memref<1x1x64xf32, #tpu.memory_space<vmem>>, vector<1x1x64xf32>
    %154 = vector.shape_cast %153 : vector<1x1x64xf32> to vector<1x64xf32>
    %155 = vector.shape_cast %152 : vector<1x64xf32> to vector<1x1x64xf32>
    tpu.vector_store %arg16[%c0_61, %c0_62, %c0_63], %155 {strides = array<i32>} : memref<1x1x64xf32, #tpu.memory_space<vmem>>, vector<1x1x64xf32>,
    return
  }
  func.func @transform_0(%arg0: i32) -> (i32, i32, i32) {
    %c0_i32 = arith.constant 0 : i32
    %c0_i32_0 = arith.constant 0 : i32
    %c0_i32_1 = arith.constant 0 : i32
    return %arg0, %c0_i32, %c0_i32_0 : i32, i32, i32
  }
  func.func @transform_1(%arg0: i32) -> (i32, i32, i32) {
    %c0_i32 = arith.constant 0 : i32
    %c0_i32_0 = arith.constant 0 : i32
    %c0_i32_1 = arith.constant 0 : i32
    return %arg0, %c0_i32, %c0_i32_0 : i32, i32, i32
  }
  func.func @transform_2(%arg0: i32) -> (i32, i32) {
    %c0_i32 = arith.constant 0 : i32
    %c0_i32_0 = arith.constant 0 : i32
    %c0_i32_1 = arith.constant 0 : i32
    return %c0_i32, %c0_i32_0 : i32, i32
  }
  func.func @transform_3(%arg0: i32) -> (i32, i32) {
    %c0_i32 = arith.constant 0 : i32
    %c0_i32_0 = arith.constant 0 : i32
    %c0_i32_1 = arith.constant 0 : i32
    return %c0_i32, %c0_i32_0 : i32, i32
  }
  func.func @transform_4(%arg0: i32) -> (i32, i32) {
    %c0_i32 = arith.constant 0 : i32
    %c0_i32_0 = arith.constant 0 : i32
    %c0_i32_1 = arith.constant 0 : i32
    return %c0_i32, %c0_i32_0 : i32, i32
  }
  func.func @transform_5(%arg0: i32) -> (i32, i32) {
    %c0_i32 = arith.constant 0 : i32
    %c0_i32_0 = arith.constant 0 : i32
    %c0_i32_1 = arith.constant 0 : i32
    return %c0_i32, %c0_i32_0 : i32, i32
  }
  func.func @transform_6(%arg0: i32) -> (i32, i32) {
    %c0_i32 = arith.constant 0 : i32
    %c0_i32_0 = arith.constant 0 : i32
    %c0_i32_1 = arith.constant 0 : i32
    return %c0_i32, %c0_i32_0 : i32, i32
  }
  func.func @transform_7(%arg0: i32) -> (i32, i32) {
    %c0_i32 = arith.constant 0 : i32
    %c0_i32_0 = arith.constant 0 : i32
    %c0_i32_1 = arith.constant 0 : i32
    return %c0_i32, %c0_i32_0 : i32, i32
  }
  func.func @transform_8(%arg0: i32) -> (i32, i32) {
    %c0_i32 = arith.constant 0 : i32
    %c0_i32_0 = arith.constant 0 : i32
    %c0_i32_1 = arith.constant 0 : i32
    return %c0_i32, %c0_i32_0 : i32, i32
  }
  func.func @transform_9(%arg0: i32) -> (i32, i32) {
    %c0_i32 = arith.constant 0 : i32
    %c0_i32_0 = arith.constant 0 : i32
    %c0_i32_1 = arith.constant 0 : i32
    return %c0_i32, %c0_i32_0 : i32, i32
  }
  func.func @transform_10(%arg0: i32) -> (i32, i32) {
    %c0_i32 = arith.constant 0 : i32
    %c0_i32_0 = arith.constant 0 : i32
    %c0_i32_1 = arith.constant 0 : i32
    return %c0_i32, %c0_i32_0 : i32, i32
  }
  func.func @transform_11(%arg0: i32) -> (i32, i32) {
    %c0_i32 = arith.constant 0 : i32
    %c0_i32_0 = arith.constant 0 : i32
    %c0_i32_1 = arith.constant 0 : i32
    return %c0_i32, %c0_i32_0 : i32, i32
  }
  func.func @transform_12(%arg0: i32) -> (i32, i32) {
    %c0_i32 = arith.constant 0 : i32
    %c0_i32_0 = arith.constant 0 : i32
    %c0_i32_1 = arith.constant 0 : i32
    return %c0_i32, %c0_i32_0 : i32, i32
  }
  func.func @transform_13(%arg0: i32) -> (i32, i32) {
    %c0_i32 = arith.constant 0 : i32
    %c0_i32_0 = arith.constant 0 : i32
    %c0_i32_1 = arith.constant 0 : i32
    return %c0_i32, %c0_i32_0 : i32, i32
  }
  func.func @transform_14(%arg0: i32) -> (i32, i32, i32) {
    %c0_i32 = arith.constant 0 : i32
    %c0_i32_0 = arith.constant 0 : i32
    %c0_i32_1 = arith.constant 0 : i32
    return %arg0, %c0_i32, %c0_i32_0 : i32, i32, i32
  }
  func.func @transform_15(%arg0: i32) -> (i32, i32, i32) {
    %c0_i32 = arith.constant 0 : i32
    %c0_i32_0 = arith.constant 0 : i32
    %c0_i32_1 = arith.constant 0 : i32
    return %arg0, %c0_i32, %c0_i32_0 : i32, i32, i32
  }
}

</mosaic_0001>

<bundles_post_ra>
// kernel: _lambda_.4
= control target key start
LH: loop header
LB: loop body
LE: loop exit
PB: predicated region body
PF: predicated region fallthrough
CT: control target
= control target key end

     0   :  { %s376_s18 = smov 0   ;;  %s408_s0 = inlined_call_operand.vmem [shape: f32[2,8,32], index: 0, kind: input, shape index: {}]   ;;  %s409_s1 = inlined_call_operand.vmem [shape: f32[8,32], index: 1, kind: input, shape index: {}]   ;;  %s410_s2 = inlined_call_operand.vmem [shape: f32[1,32], index: 2, kind: input, shape index: {}]   ;;  %s411_s3 = inlined_call_operand.vmem [shape: f32[1,32], index: 3, kind: input, shape index: {}]   ;;  %s412_s4 = inlined_call_operand.vmem [shape: f32[1,32], index: 4, kind: input, shape index: {}]   ;;  %s413_s5 = inlined_call_operand.vmem [shape: f32[2,8,32], index: 5, kind: output, shape index: {}]  }
   0x1 LB: > { %s316_s19 = sadd.s32 4294967295, %s344_s18   ;;  %p320_p0 = scmp.ge.s32.totalorder %s344_s18, 1  ;;  %s344_s18 = sphi %s376_s18, %s15_s18  }
   0x2   : > { %p186_p1 = scmp.lt.s32.totalorder %s344_s18, 3 }
   0x4   : > { %p187_p2 = pnand %p320_p0, %p186_p1 }
   0x5   : > { %p212_p3 = scmp.lt.s32.totalorder (!%p187_p2), %s316_s19, 1 }
   0x6   : > { %190 = sbr.rel (%p187_p2) target bundleno = 328 (0x148), region = 40 }
   0xb   : > { %s415_s19 = smov (!%p212_p3, %s316_s19), 1  ;;  %v221_v0 = vld [vmem:[%s409_s1] sm:$0xff]  ;;  %vm233_vm0 = vcmask 261120  }
   0xc   : > { %s321_s20 = sshll.u32 %s415_s19, 3  ;;  %v323_v2 = vld [vmem:[%s410_s2] ss:$0 sm:$0xff] }
   0xd   : > { %s215_s25 = scalar_lea.vmem %s408_s0, %s321_s20  ;;  %v324_v15 = vld [vmem:[%s411_s3] ss:$0 sm:$0xff]  ;;  %s219_s9 = scalar_lea.vmem %s413_s5, %s321_s20 }
   0xe   : > { %v220_v1 = vld [vmem:[%s215_s25] sm:$0xff] }
   0xf   : > { %v222_v3 = vadd.f32 %v221_v0, %v220_v1  ;;  %v325_v17 = vld [vmem:[%s412_s4] ss:$0 sm:$0xff] }
  0x11   : > { %v230_v4 = vadd.f32 %v323_v2, %v222_v3 }
  0x13   : > { %v234_v5 = vsel %vm233_vm0, %v230_v4, 0.0 }
  0x14   : > { %235 = vadd.xlane.f32.xlu0 %v234_v5 }
  0x9d   : > { %v236_v6 = vpop.xlane.xlu0 %235 }
  0x9e   : > { %v238_v7 = vmul.f32 0.03125, %v236_v6 }
  0xa0   : > { %v239_v8 = vsub.f32 %v230_v4, %v238_v7 }
  0xa2   : > { %v240_v9 = vmul.f32 %v239_v8, %v239_v8 }
  0xa4   : > { %v241_v10 = vsel %vm233_vm0, %v240_v9, 0.0 }
  0xa5   : > { %242 = vadd.xlane.f32.xlu0 %v241_v10 }
 0x12e   : > { %v243_v11 = vpop.xlane.xlu0 %242 }
 0x12f   : > { %v244_v12 = vmul.f32 0.03125, %v243_v11 }
 0x131   : > { %v245_v13 = vadd.f32 1e-12, %v244_v12 }
 0x133   : > { %336 = vrsqrt.f32 %v245_v13 }
 0x140   : > { %v337_v14 = vpop.eup %336 }
 0x141   : > { %v247_v16 = vmul.f32 %v337_v14, %v239_v8 }
 0x143   : > { %v254_v18 = vmul.f32 %v324_v15, %v247_v16 }
 0x145   : > { %v261_v19 = vadd.f32 %v325_v17, %v254_v18 }
 0x147   : > { %262 = vst.msk [vmem:[%s219_s9] sm:$0xff] %vm233_vm0, %v261_v19 }
 0x148 PF: > { %s15_s18 = sadd.s32 1, %s344_s18  }
 0x149   : > { %p12_p4 = scmp.ge.s32.totalorder %s15_s18, 4  }
 0x14b   :  { %14 = sbr.rel (!%p12_p4) target bundleno = 1 (0x1), region = 70 }

// kernel: _lambda_.7
= control target key start
LH: loop header
LB: loop body
LE: loop exit
PB: predicated region body
PF: predicated region fallthrough
CT: control target
= control target key end

     0   :  { %8 = vsyncpa [#allocation3], 0  ;;  %s582_s0 = inlined_call_operand.vmem [shape: f32[2,1,64], index: 0, kind: input, shape index: {}]   ;;  %s583_s1 = inlined_call_operand.vmem [shape: bf16[64,2], index: 1, kind: input, shape index: {}]   ;;  %s584_s2 = inlined_call_operand.vmem [shape: f32[1,2], index: 2, kind: input, shape index: {}]   ;;  %s585_s3 = inlined_call_operand.hbm [shape: f32[2,1,2], index: 3, kind: output, shape index: {}]  }
   0x1   :  { %10 = vsyncpa [#allocation3 + $0x1], 0  ;;  %s468_s12 = smov 0   ;;  %s470_s13 = smov 0  }
   0x2   :  { %s472_s14 = smov 0   ;;  %s474_s15 = smov 0  }
   0x3 LB: > { %s489_s16 = sadd.s32 4294967295, %s443_s15   ;;  %s309_s17 = sadd.s32 4294967294, %s443_s15   ;;  %s443_s15 = sphi %s474_s15, %s591_s15   ;;  %s439_s14 = sphi %s472_s14, %s590_s14   ;;  %s435_s13 = sphi %s470_s13, %s589_s13   ;;  %s431_s12 = sphi %s468_s12, %s588_s12  }
   0x4   : > { %s493_s18 = sadd.s32 1, %s443_s15   ;;  %s91_s19 = sadd.s32 1, %s439_s14 }
   0x5   : > { %s88_s20 = ssub.s32 %s443_s15, %s493_s18  ;;  %p101_p0 = scmp.ne.s32.totalorder %s439_s14, %s435_s13 }
   0x6   : > { %p89_p1 = scmp.eq.s32.totalorder %s88_s20, 0  ;;  %p102_p2 = scmp.eq.s32.totalorder %s489_s16, 1 }
   0x7   : > { %p107_p3 = scmp.ne.s32.totalorder %s435_s13, %s431_s12  ;;  %p108_p4 = scmp.eq.s32.totalorder %s309_s17, 1 }
   0x8   : > { %s504_s21 = scalar_select %p89_p1, %s439_s14, %s91_s19  }
   0x9   : > { %p506_p5 = por %p102_p2, %p101_p0  ;;  %p510_p6 = por %p108_p4, %p107_p3 }
   0xa   : > { %p312_p7 = scmp.ge.s32.totalorder %s443_s15, 1  ;;  %p138_p8 = scmp.lt.s32.totalorder %s443_s15, 3 }
   0xc   : > { %p139_p9 = pnand %p312_p7, %p138_p8 }
   0xd   : > { %p159_p10 = scmp.lt.s32.totalorder (!%p139_p9), %s489_s16, 1  ;;  %s157_s9 = sand.u32 (!%p139_p9), 1, %s435_s13  }
   0xe   : > { %142 = sbr.rel (%p139_p9) target bundleno = 245 (0xf5), region = 32  ;;  %s318_s17 = sshll.u32 (!%p139_p9), %s489_s16, 4 }
   0xf   : > { %s158_s19 = scalar_lea.vmem (!%p139_p9), [#allocation2], %s157_s9  ;;  %s541_s26 = scalar_lea.hbm (!%p139_p9), %s585_s3, %s318_s17 }
  0x10   : > { %s257_s20 = sshll.u32 (!%p139_p9), %s158_s19, 4  ;;  %s245_s27 = scalar_lea.sflag (!%p139_p9), [#allocation3], %s157_s9  ;;  %s543_s20 = int_to_ptr.vmem [resolvable:$true] %s257_s20 }
  0x13   : > { %v379_v0 = vld [vmem:[%s583_s1 + $0x18] sm:$0xff]   ;;  %v445_v1 = vmov 0.0   ;;  %v380_v2 = vld [vmem:[%s583_s1 + $0x10] sm:$0xff]   ;;  %vm446_vm0 = vmmov 0   ;;  %s160_s28 = scalar_select %p159_p10, %s489_s16, 1  ;;  %v381_v3 = vld [vmem:[%s583_s1 + $0x8] sm:$0xff]  }
  0x14   : > { %326 = vmatprep.subr.bf16.mxu0 %v445_v1  ;;  %334 = vmatprep.mubr.msk.bf16.mxu0 %vm446_vm0, %v445_v1  ;;  %v382_v4 = vld [vmem:[%s583_s1] sm:$0xff]   ;;  %vm198_vm1 = vcmask 523264   ;;  %vm242_vm2 = vcmask 8192   ;;  %s383_s16 = scalar_lea.vmem %s543_s20, 16 }
  0x15   : > { %327 = vmatpush3.bf16.msra.mxu0 %v379_v0  ;;  %s161_s6 = scalar_lea.vmem %s582_s0, %s160_s28  ;;  %v173_v7 = vld [vmem:[%s584_s2] sm:$0x1]  ;;  %p384_p11 = scmp.ne.s32.totalorder %s543_s20, %s383_s16 }
  0x16   : > { %328 = vmatprep.subr.bf16.mxu0 %v445_v1  ;;  %v163_v5 = vld [vmem:[%s161_s6] sm:$0x1]  ;;  %s447_s28 = smov [#allocation2]  }
  0x17   : > { %v164_v6 = vpack.c.bf16 %v163_v5, %v163_v5  ;;  %p385_p12 = pnand %p384_p11, %p506_p5  ;;  %s387_s29 = sshll.u32 %s447_s28, 4  ;;  %s388_s29 = int_to_ptr.vmem [resolvable:$false] %s387_s29 }
  0x18   : > { %s389_s30 = scalar_lea.vmem %s388_s29, 32  ;;  %p390_p0 = scmp.lt.s32.totalorder %s543_s20, %s388_s29 }
  0x19   : > { %329 = vmatpush3.bf16.msra.mxu0 %v380_v2  ;;  %p386_p13 = pneg %p385_p12  ;;  %p391_p1 = scmp.lt.s32.totalorder %s389_s30, %s383_s16 }
  0x1a   : > { %330 = vmatprep.subr.bf16.mxu0 %v445_v1 }
  0x1b   : > { %p392_p2 = por %p391_p1, %p390_p0 }
  0x1d   : > { %331 = vmatpush3.bf16.msra.mxu0 %v381_v3  ;;  %p393_p3 = pnand %p392_p2, %p386_p13 }
  0x1e   : > { %332 = vmatprep.subr.bf16.mxu0 %v445_v1 }
  0x21   : > { %333 = vmatpush3.bf16.msra.mxu0 %v382_v4 }
  0x24   : > { %335 = vmatmul.mubr.msk.bf16.vlgmr.msra.gmra.mxu0 %vm198_vm1, %v164_v6 }
  0xe4   : > { %v236_v8 = vpop.f32.mrf.mxu0 }
  0xe5   : > { %v237_v9 = vadd.f32 %v236_v8, %v173_v7 }
  0xe6   : > { %v336_v10 = vpop.f32.mrf.mxu0 }
  0xe7   : > { %243 = vst.msk [vmem:[%s158_s19] sm:$0x1] %vm242_vm2, %v237_v9 }
  0xe8   : > { %v239_v11 = vpop.f32.mrf.mxu0 }
  0xe9   : > { %396 = shalt.err (!%p393_p3)
}
  0xea   : > { %s397_s4 = scalar_lea.hbm %s541_s26, 16  ;;  %s401_s7 = scalar_lea.hbm %s585_s3, 32 }
  0xeb   : > { %p398_p4 = scmp.ne.s32.totalorder %s541_s26, %s397_s4  ;;  %p402_p9 = scmp.lt.s32.totalorder %s541_s26, %s585_s3 }
  0xec   : > { %p403_p10 = scmp.lt.s32.totalorder %s401_s7, %s397_s4 }
  0xed   : > { %p399_p7 = pnand %p398_p4, %p506_p5 }
  0xee   : > { %p404_p11 = por %p403_p10, %p402_p9 }
  0xef   : > { %p400_p8 = pneg %p399_p7 }
  0xf1   : > { %p405_p12 = pnand %p404_p11, %p400_p8 }
  0xf3   : > { %408 = shalt.err (!%p405_p12)
}
  0xf4   : > { %338 = dma.vmem_to_hbm [thread:$0]  (%p506_p5), %s543_s20, 16, %s541_s26, %s245_s27   ;;  %v337_v12 = vpop.f32.mrf.mxu0 }
  0xf5 PF: > { %p344_p13 = scmp.ge.s32.totalorder %s443_s15, 2  ;;  %s269_s10 = sand.u32 1, %s431_s12  }
  0xf6   : > { %s270_s11 = scalar_lea.sflag [#allocation3], %s269_s10 }
  0xf7   : > { %p341_p0 = pnand %p344_p13, %p510_p6 }
  0xf9   : > { %p342_p1 = pneg %p341_p0 }
  0xfb   : > { %426 = dma.done.wait (%p342_p1), %s270_s11, 16  }
  0xfc   : > { %428 = vsyncadd (%p342_p1), %s270_s11, 4294967280  ;;  %p13_p2 = scmp.ge.s32.totalorder %s493_s18, 4   ;;  %s588_s12 = smov %s435_s13 }
  0xfd   : > { %s589_s13 = smov %s439_s14  ;;  %s590_s14 = smov %s504_s21 }
  0xfe   : > { %s591_s15 = smov %s493_s18  ;;  %15 = sbr.rel (!%p13_p2) target bundleno = 3 (0x3), region = 67 }
 0x103   :  { %274 = vsyncpa [#allocation3], 1 }
 0x104   :  { %276 = vsyncpa [#allocation3 + $0x1], 1 }

// kernel: _lambda_.6
= control target key start
LH: loop header
LB: loop body
LE: loop exit
PB: predicated region body
PF: predicated region fallthrough
CT: control target
= control target key end

     0   :  { %s1788_s0 = inlined_call_operand.vmem [shape: f32[2,8,32], index: 0, kind: input, shape index: {}]   ;;  %s1789_s1 = inlined_call_operand.vmem [shape: f32[2,1,8], index: 1, kind: input, shape index: {}]   ;;  %s1790_s2 = inlined_call_operand.vmem [shape: bf16[32,96], index: 2, kind: input, shape index: {}]   ;;  %s1791_s3 = inlined_call_operand.vmem [shape: f32[1,96], index: 3, kind: input, shape index: {}]   ;;  %s1792_s4 = inlined_call_operand.vmem [shape: bf16[32,32], index: 4, kind: input, shape index: {}]   ;;  %s1793_s5 = inlined_call_operand.vmem [shape: f32[1,32], index: 5, kind: input, shape index: {}, may-alias: {5,7,11,13}]   ;;  %s1794_s6 = inlined_call_operand.vmem [shape: f32[1,32], index: 6, kind: input, shape index: {}, may-alias: {6,12}]   ;;  %s1795_s7 = inlined_call_operand.vmem [shape: f32[1,32], index: 7, kind: input, shape index: {}, may-alias: {5,7,11,13}]   ;;  %s1796_s8 = inlined_call_operand.vmem [shape: bf16[32,64], index: 8, kind: input, shape index: {}]   ;;  %s1797_s9 = inlined_call_operand.vmem [shape: f32[1,64], index: 9, kind: input, shape index: {}]   ;;  %s1798_s10 = inlined_call_operand.vmem [shape: bf16[64,32], index: 10, kind: input, shape index: {}]   ;;  %s1799_s11 = inlined_call_operand.vmem [shape: f32[1,32], index: 11, kind: input, shape index: {}, may-alias: {5,7,11,13}]   ;;  %s1800_s12 = inlined_call_operand.vmem [shape: f32[1,32], index: 12, kind: input, shape index: {}, may-alias: {6,12}]   ;;  %s1801_s13 = inlined_call_operand.vmem [shape: f32[1,32], index: 13, kind: input, shape index: {}, may-alias: {5,7,11,13}]   ;;  %s1802_s14 = inlined_call_operand.hbm [shape: f32[2,8,32], index: 14, kind: output, shape index: {0}]   ;;  %s1803_s15 = inlined_call_operand.vmem [shape: f32[2,1,64], index: 15, kind: output, shape index: {1}]  }
   0x1   :  { %1804 = sst [smem:[#allocation5_spill]] %s1788_s0 }
   0x2   :  { %1805 = sst [smem:[#allocation6_spill]] %s1789_s1 }
   0x3   :  { %1806 = sst [smem:[#allocation7_spill]] %s1790_s2 }
   0x4   :  { %1807 = sst [smem:[#allocation8_spill]] %s1791_s3 }
   0x5   :  { %1808 = sst [smem:[#allocation9_spill]] %s1792_s4 }
   0x6   :  { %1809 = sst [smem:[#allocation10_spill]] %s1793_s5 }
   0x7   :  { %1810 = sst [smem:[#allocation11_spill]] %s1794_s6 }
   0x8   :  { %21 = vsyncpa [#allocation3], 0 }
   0x9   :  { %23 = vsyncpa [#allocation3 + $0x1], 0  ;;  %s1580_s18 = smov 0   ;;  %s1582_s19 = smov 0  }
   0xa   :  { %s1584_s20 = smov 0   ;;  %s1586_s21 = smov 0  }
   0xb LB: > { %s1601_s22 = sadd.s32 4294967295, %s1488_s21   ;;  %s1237_s23 = sadd.s32 4294967294, %s1488_s21   ;;  %s1488_s21 = sphi %s1586_s21, %s1823_s21   ;;  %s1484_s20 = sphi %s1584_s20, %s1822_s20   ;;  %s1480_s19 = sphi %s1582_s19, %s1821_s19   ;;  %s1476_s18 = sphi %s1580_s18, %s1820_s18  }
   0xc   : > { %s1605_s24 = sadd.s32 1, %s1488_s21   ;;  %s340_s25 = sadd.s32 1, %s1484_s20 }
   0xd   : > { %s337_s26 = ssub.s32 %s1488_s21, %s1605_s24  ;;  %p350_p0 = scmp.ne.s32.totalorder %s1484_s20, %s1480_s19 }
   0xe   : > { %p338_p1 = scmp.eq.s32.totalorder %s337_s26, 0  ;;  %p351_p2 = scmp.eq.s32.totalorder %s1601_s22, 1 }
   0xf   : > { %p356_p3 = scmp.ne.s32.totalorder %s1480_s19, %s1476_s18  ;;  %p357_p4 = scmp.eq.s32.totalorder %s1237_s23, 1 }
  0x10   : > { %s1616_s27 = scalar_select %p338_p1, %s1484_s20, %s340_s25  }
  0x11   : > { %p1618_p5 = por %p351_p2, %p350_p0  ;;  %p1622_p6 = por %p357_p4, %p356_p3 }
  0x12   : > { %p1240_p7 = scmp.ge.s32.totalorder %s1488_s21, 1  ;;  %p450_p8 = scmp.lt.s32.totalorder %s1488_s21, 3 }
  0x14   : > { %p451_p9 = pnand %p1240_p7, %p450_p8 }
  0x15   : > { %s1813_s2 = sld [smem:[#allocation7_spill]] (!%p451_p9)  ;;  %p503_p10 = scmp.lt.s32.totalorder (!%p451_p9), %s1601_s22, 1 }
  0x16   : > { %454 = sbr.rel (%p451_p9) target bundleno = 2567 (0xa07), region = 76  ;;  %s1814_s0 = sld [smem:[#allocation5_spill]] (!%p451_p9) }
  0x17   : > { %s1815_s3 = sld [smem:[#allocation8_spill]] (!%p451_p9)  ;;  %s1493_s30 = smov (!%p451_p9), 96  }
  0x18   : > { %s1494_s16 = smov (!%p451_p9), 80   ;;  %s1816_s1 = sld [smem:[#allocation6_spill]] (!%p451_p9) }
  0x19   : > { %s1817_s4 = sld [smem:[#allocation9_spill]] (!%p451_p9) }
  0x1a   : > { %s1818_s5 = sld [smem:[#allocation10_spill]] (!%p451_p9) }
  0x1b   : > { %v1404_v0 = vld [vmem:[%s1813_s2 + $0x8] sm:$0xff]   ;;  %v1490_v1 = vmov 0.0   ;;  %v1405_v2 = vld [vmem:[%s1813_s2] sm:$0xff]   ;;  %vm1491_vm0 = vmmov 0   ;;  %s1643_s25 = scalar_select %p503_p10, %s1601_s22, 1  ;;  %vm540_vm1 = vcmask 261120  }
  0x1c   : > { %1296 = vmatprep.subr.bf16.mxu0 %v1490_v1  ;;  %1304 = vmatprep.subr.bf16.mxu1 %v1490_v1  ;;  %vm588_vm2 = vcmask 130048   ;;  %vm643_vm3 = vcmask 64512   ;;  %vm661_vm4 = vcmask 1043456   ;;  %s1819_s6 = sld [smem:[#allocation11_spill]]  ;;  %vm1036_vm5 = vcmask 523264  }
  0x1d   : > { %1297 = vmatpush3.bf16.msra.mxu0 %v1404_v0  ;;  %1300 = vmatprep.mubr.msk.bf16.mxu0 %vm1491_vm0, %v1490_v1  ;;  %s1242_s26 = sshll.u32 %s1643_s25, 3  ;;  %v1243_v5 = vld [vmem:[%s1815_s3] ss:$0 sm:$0xff] }
  0x1e   : > { %1298 = vmatprep.subr.bf16.mxu0 %v1490_v1  ;;  %1306 = vmatprep.mubr.msk.bf16.mxu1 %vm1491_vm0, %v1490_v1  ;;  %s506_s17 = scalar_lea.vmem %s1814_s0, %s1242_s26  ;;  %s1492_s26 = smov 112  }
  0x1f   : > { %v1650_v3 = vld [vmem:[%s506_s17] sm:$0xff]  ;;  %s509_s23 = scalar_lea.vmem %s1816_s1, %s1643_s25  ;;  %v1406_v54 = vld [vmem:[%s1817_s4 + $0x8] sm:$0xff]  }
  0x20   : > { %v516_v4 = vpack.c.bf16 %v1650_v3, %v1650_v3  ;;  %v1248_v18 = vld [vmem:[%s509_s23] ss:$0 sm:$0xff] }
  0x21   : > { %1299 = vmatpush3.bf16.msra.mxu0 %v1405_v2  ;;  %v1407_v55 = vld [vmem:[%s1817_s4] sm:$0xff]  }
  0x22   : > { %1310 = vmatprep.subr.bf16.mxu0 %v1490_v1 }
  0x24   : > { %1301 = vmatmul.mubr.msk.bf16.vlgmr.msra.gmra.mxu0 %vm540_vm1, %v516_v4 }
  0x25   : > { %1312 = vmatprep.mubr.msk.bf16.mxu0 %vm1491_vm0, %v1490_v1 }
  0xe4   : > { %v578_v6 = vpop.f32.mrf.mxu0 }
  0xe5   : > { %v579_v7 = vadd.f32 %v1243_v5, %v578_v6  ;;  %v1252_v5 = vld [vmem:[%s1818_s5] ss:$0 sm:$0xff] }
  0xe6   : > { %v1302_v8 = vpop.f32.mrf.mxu0 }
  0xe7   : > { %v584_v9 = vpack.c.bf16 %v579_v7, %v579_v7 }
  0xe8   : > { %v581_v10 = vpop.f32.mrf.mxu0 }
  0xe9   : > { %705 = vrot.lane.b32.xlu1 %v584_v9, %s1492_s26  ;;  %586 = vrot.lane.b32.xlu0 %v584_v9, %s1493_s30  ;;  %s1495_s26 = smov 64   ;;  %s1496_s30 = smov 48  }
  0xea   : > { %v1303_v11 = vpop.f32.mrf.mxu0 }
  0xed   : > { %707 = vrot.lane.b32.xlu0 %v584_v9, %s1494_s16 }
 0x15b   : > { %v587_v12 = vpop.permute.xlu0 %586  ;;  %v706_v16 = vpop.permute.xlu1 %705 }
 0x15c   : > { %v593_v13 = vsel %vm588_vm2, %v587_v12, 0 }
 0x15d   : > { %1305 = vmatpush3.bf16.xpose.msra.mxu1 %v593_v13 }
 0x15e   : > { %1316 = vmatprep.subr.bf16.mxu1 %v1490_v1 }
 0x15f   : > { %v708_v14 = vpop.permute.xlu0 %707 }
 0x160   : > { %v713_v15 = vsel %vm588_vm2, %v708_v14, 0 }
 0x164   : > { %1307 = vmatmul.mubr.msk.bf16.vlgmr.msra.gmra.mxu1 %vm588_vm2, %v584_v9 }
 0x165   : > { %1317 = vmatpush3.bf16.xpose.msra.mxu1 %v713_v15  ;;  %1318 = vmatprep.mubr.msk.bf16.mxu1 %vm1491_vm0, %v1490_v1 }
 0x166   : > { %1328 = vmatprep.subr.bf16.mxu1 %v1490_v1 }
 0x16c   : > { %1319 = vmatmul.mubr.msk.bf16.vlgmr.msra.gmra.mxu1 %vm588_vm2, %v706_v16 }
 0x16d   : > { %1332 = vmatprep.mubr.msk.bf16.mxu1 %vm1491_vm0, %v1490_v1  ;;  %1329 = vmatpush3.bf16.msra.mxu1 %v1406_v54 }
 0x16e   : > { %1330 = vmatprep.subr.bf16.mxu1 %v1490_v1 }
 0x171   : > { %1331 = vmatpush3.bf16.msra.mxu1 %v1407_v55 }
 0x172   : > { %1344 = vmatprep.subr.bf16.mxu1 %v1490_v1 }
 0x224   : > { %v629_v17 = vpop.f32.mrf.mxu1 }
 0x225   : > { %v635_v19 = vmul.f32 0.25, %v629_v17 }
 0x226   : > { %v1308_v20 = vpop.f32.mrf.mxu1 }
 0x227   : > { %v642_v21 = vadd.f32 %v1248_v18, %v635_v19 }
 0x228   : > { %v632_v22 = vpop.f32.mrf.mxu1 }
 0x229   : > { %v644_v23 = vsel %vm643_vm3, %v642_v21, -inf }
 0x22a   : > { %645 = vmax.xlane.f32.xlu1 %v644_v23  ;;  %v1309_v24 = vpop.f32.mrf.mxu1  ;;  %v1256_v23 = vld [vmem:[%s1819_s6] ss:$0 sm:$0xff] }
 0x22c   : > { %v749_v25 = vpop.f32.mrf.mxu1 }
 0x22d   : > { %v755_v26 = vmul.f32 0.25, %v749_v25  ;;  %v1257_v25 = vld [vmem:[%s1795_s7] ss:$0 sm:$0xff] }
 0x22e   : > { %v1320_v27 = vpop.f32.mrf.mxu1 }
 0x22f   : > { %v756_v28 = vadd.f32 %v1248_v18, %v755_v26  ;;  %v1408_v18 = vld [vmem:[%s1796_s8 + $0x8] sm:$0xff]  }
 0x230   : > { %v752_v29 = vpop.f32.mrf.mxu1 }
 0x231   : > { %v757_v30 = vsel %vm643_vm3, %v756_v28, -inf  ;;  %v1410_v29 = vld [vmem:[%s1798_s10 + $0x18] sm:$0xff]  }
 0x232   : > { %758 = vmax.xlane.f32.xlu0 %v757_v30  ;;  %v1321_v31 = vpop.f32.mrf.mxu1  ;;  %v1411_v30 = vld [vmem:[%s1798_s10 + $0x10] sm:$0xff]  }
 0x233   : > { %v1412_v31 = vld [vmem:[%s1798_s10 + $0x8] sm:$0xff]  }
 0x2b3   : > { %v646_v32 = vpop.xlane.xlu1 %645 }
 0x2b4   : > { %v647_v33 = vsub.f32 %v642_v21, %v646_v32  ;;  %v1413_v32 = vld [vmem:[%s1798_s10] sm:$0xff]  }
 0x2b6   : > { %v648_v34 = vmul.f32 1.442695, %v647_v33  ;;  %v1258_v33 = vld [vmem:[%s1797_s9] ss:$0 sm:$0xff] }
 0x2b8   : > { %1414 = vpow2.f32 %v648_v34 }
 0x2bb   : > { %v759_v35 = vpop.xlane.xlu0 %758 }
 0x2bc   : > { %v760_v36 = vsub.f32 %v756_v28, %v759_v35 }
 0x2be   : > { %v761_v37 = vmul.f32 1.442695, %v760_v36 }
 0x2c0   : > { %1416 = vpow2.f32 %v761_v37 }
 0x2c5   : > { %v1415_v38 = vpop.eup %1414 }
 0x2c6   : > { %v650_v39 = vsel %vm643_vm3, %v1415_v38, 0.0 }
 0x2c7   : > { %651 = vadd.xlane.f32.xlu0 %v650_v39 }
 0x2cd   : > { %v1417_v40 = vpop.eup %1416 }
 0x2ce   : > { %v763_v41 = vsel %vm643_vm3, %v1417_v40, 0.0 }
 0x2cf   : > { %764 = vadd.xlane.f32.xlu1 %v763_v41 }
 0x2dd   : > { %656 = vrot.lane.b32.xlu0 %v584_v9, %s1495_s26  ;;  %s1497_s26 = smov 16  }
 0x2e0   : > { %769 = vrot.lane.b32.xlu1 %v584_v9, %s1496_s30  ;;  %s495_s30 = sand.u32 1, %s1480_s19  }
 0x2e1   : > { %s1241_s17 = sshll.u32 %s495_s30, 3  ;;  %s1131_s23 = scalar_lea.sflag [#allocation3], %s495_s30 }
 0x2e2   : > { %s497_s1 = scalar_lea.vmem [#allocation2], %s1241_s17  ;;  %s1498_s17 = smov [#allocation2]  }
 0x2e3   : > { %s1147_s3 = sshll.u32 %s497_s1, 4  ;;  %s1432_s5 = sshll.u32 %s1498_s17, 4  ;;  %s1148_s3 = int_to_ptr.vmem [resolvable:$true] %s1147_s3  ;;  %s1433_s5 = int_to_ptr.vmem [resolvable:$false] %s1432_s5 }
 0x2e4   : > { %s1428_s0 = scalar_lea.vmem %s1148_s3, 128  ;;  %s1434_s6 = scalar_lea.vmem %s1433_s5, 256 }
 0x2e5   : > { %p1429_p11 = scmp.ne.s32.totalorder %s1148_s3, %s1428_s0  ;;  %p1435_p0 = scmp.lt.s32.totalorder %s1148_s3, %s1433_s5 }
 0x2e6   : > { %p1436_p1 = scmp.lt.s32.totalorder %s1434_s6, %s1428_s0 }
 0x2e7   : > { %p1430_p12 = pnand %p1429_p11, %p1618_p5 }
 0x2e8   : > { %p1437_p2 = por %p1436_p1, %p1435_p0 }
 0x2e9   : > { %p1431_p13 = pneg %p1430_p12 }
 0x2eb   : > { %p1438_p3 = pnand %p1437_p2, %p1431_p13 }
 0x350   : > { %v652_v42 = vpop.xlane.xlu0 %651 }
 0x351   : > { %1418 = vrcp.f32 %v652_v42 }
 0x354   : > { %v657_v43 = vpop.permute.xlu0 %656 }
 0x355   : > { %v663_v44 = vsel %vm661_vm4, %v657_v43, 0 }
 0x356   : > { %1311 = vmatpush3.bf16.msra.mxu0 %v663_v44 }
 0x357   : > { %1322 = vmatprep.subr.bf16.mxu0 %v1490_v1 }
 0x358   : > { %v765_v45 = vpop.xlane.xlu1 %764 }
 0x359   : > { %1420 = vrcp.f32 %v765_v45 }
 0x35c   : > { %v770_v48 = vpop.permute.xlu1 %769 }
 0x35d   : > { %v775_v50 = vsel %vm661_vm4, %v770_v48, 0  ;;  %v1262_v48 = vld [vmem:[%s1799_s11] ss:$0 sm:$0xff] }
 0x35e   : > { %v1419_v46 = vpop.eup %1418 }
 0x35f   : > { %v654_v47 = vmul.f32 %v1419_v46, %v1415_v38 }
 0x361   : > { %v655_v49 = vpack.c.bf16 %v654_v47, %v654_v47 }
 0x363   : > { %1313 = vmatmul.mubr.msk.bf16.vlgmr.msra.gmra.mxu0 %vm643_vm3, %v655_v49 }
 0x364   : > { %1323 = vmatpush3.bf16.msra.mxu0 %v775_v50  ;;  %1324 = vmatprep.mubr.msk.bf16.mxu0 %vm1491_vm0, %v1490_v1 }
 0x365   : > { %1336 = vmatprep.subr.bf16.mxu0 %v1490_v1 }
 0x366   : > { %v1421_v51 = vpop.eup %1420 }
 0x367   : > { %v767_v52 = vmul.f32 %v1421_v51, %v1417_v40 }
 0x369   : > { %v768_v53 = vpack.c.bf16 %v767_v52, %v767_v52 }
 0x36b   : > { %1325 = vmatmul.mubr.msk.bf16.vlgmr.msra.gmra.mxu0 %vm643_vm3, %v768_v53 }
 0x36c   : > { %1340 = vmatprep.mubr.msk.bf16.mxu0 %vm1491_vm0, %v1490_v1  ;;  %1337 = vmatpush3.bf16.msra.mxu0 %v1408_v18 }
 0x36d   : > { %1338 = vmatprep.subr.bf16.mxu0 %v1490_v1 }
 0x423   : > { %v699_v56 = vpop.f32.mrf.mxu0 }
 0x425   : > { %v1314_v57 = vpop.f32.mrf.mxu0 }
 0x427   : > { %v702_v58 = vpop.f32.mrf.mxu0 }
 0x429   : > { %v1315_v59 = vpop.f32.mrf.mxu0 }
 0x42b   : > { %v811_v60 = vpop.f32.mrf.mxu0 }
 0x42c   : > { %818 = vrot.lane.b32.xlu1 %v811_v60, %s1497_s26  ;;  %s1271_s26 = sshll.u32 %s1601_s22, 7 }
 0x42d   : > { %v1326_v61 = vpop.f32.mrf.mxu0  ;;  %s1145_s4 = scalar_lea.hbm %s1802_s14, %s1271_s26 }
 0x42f   : > { %v814_v62 = vpop.f32.mrf.mxu0 }
 0x431   : > { %v1327_v63 = vpop.f32.mrf.mxu0 }
 0x49e   : > { %v819_v0 = vpop.permute.xlu1 %818 }
 0x49f   : > { %v821_v2 = vsel %vm588_vm2, %v699_v56, %v819_v0 }
 0x4a0   : > { %v822_v4 = vpack.c.bf16 %v821_v2, %v821_v2  ;;  %v1268_v2 = vld [vmem:[%s1800_s12] ss:$0 sm:$0xff] }
 0x4a2   : > { %1333 = vmatmul.mubr.msk.bf16.vlgmr.msra.gmra.mxu1 %vm540_vm1, %v822_v4 }
 0x4a3   : > { %1352 = vmatprep.mubr.msk.bf16.mxu1 %vm1491_vm0, %v1490_v1  ;;  %1345 = vmatpush3.bf16.msra.mxu1 %v1410_v29 }
 0x4a4   : > { %1346 = vmatprep.subr.bf16.mxu1 %v1490_v1 }
 0x4a7   : > { %1347 = vmatpush3.bf16.msra.mxu1 %v1411_v30 }
 0x4a8   : > { %1348 = vmatprep.subr.bf16.mxu1 %v1490_v1 }
 0x4ab   : > { %1349 = vmatpush3.bf16.msra.mxu1 %v1412_v31 }
 0x4ac   : > { %1350 = vmatprep.subr.bf16.mxu1 %v1490_v1 }
 0x4af   : > { %1351 = vmatpush3.bf16.msra.mxu1 %v1413_v32 }
 0x562   : > { %v883_v6 = vpop.f32.mrf.mxu1 }
 0x563   : > { %v884_v7 = vadd.f32 %v1252_v5, %v883_v6  ;;  %v1269_v5 = vld [vmem:[%s1801_s13] ss:$0 sm:$0xff] }
 0x564   : > { %v1334_v8 = vpop.f32.mrf.mxu1 }
 0x565   : > { %v889_v9 = vadd.f32 %v884_v7, %v1650_v3  ;;  %v1409_v3 = vld [vmem:[%s1796_s8] sm:$0xff]  }
 0x566   : > { %v886_v10 = vpop.f32.mrf.mxu1  ;;  %1339 = vmatpush3.bf16.msra.mxu0 %v1409_v3 }
 0x567   : > { %v892_v11 = vsel %vm540_vm1, %v889_v9, 0.0 }
 0x568   : > { %893 = vadd.xlane.f32.xlu0 %v892_v11  ;;  %v1335_v12 = vpop.f32.mrf.mxu1 }
 0x5f1   : > { %v894_v13 = vpop.xlane.xlu0 %893 }
 0x5f2   : > { %v896_v14 = vmul.f32 0.03125, %v894_v13 }
 0x5f4   : > { %v897_v15 = vsub.f32 %v889_v9, %v896_v14 }
 0x5f6   : > { %v898_v16 = vmul.f32 %v897_v15, %v897_v15 }
 0x5f8   : > { %v899_v17 = vsel %vm540_vm1, %v898_v16, 0.0 }
 0x5f9   : > { %900 = vadd.xlane.f32.xlu1 %v899_v17 }
 0x682   : > { %v901_v19 = vpop.xlane.xlu1 %900 }
 0x683   : > { %v902_v20 = vmul.f32 0.03125, %v901_v19 }
 0x685   : > { %v903_v21 = vadd.f32 1e-12, %v902_v20 }
 0x687   : > { %1422 = vrsqrt.f32 %v903_v21 }
 0x694   : > { %v1423_v22 = vpop.eup %1422 }
 0x695   : > { %v905_v24 = vmul.f32 %v1423_v22, %v897_v15 }
 0x697   : > { %v912_v26 = vmul.f32 %v1256_v23, %v905_v24 }
 0x699   : > { %v919_v27 = vadd.f32 %v1257_v25, %v912_v26 }
 0x69b   : > { %v920_v28 = vpack.c.bf16 %v919_v27, %v919_v27 }
 0x69d   : > { %1341 = vmatmul.mubr.msk.bf16.vlgmr.msra.gmra.mxu0 %vm540_vm1, %v920_v28 }
 0x75d   : > { %v981_v34 = vpop.f32.mrf.mxu0 }
 0x75e   : > { %v982_v35 = vadd.f32 %v1258_v33, %v981_v34 }
 0x75f   : > { %v1342_v36 = vpop.f32.mrf.mxu0 }
 0x760   : > { %v988_v37 = vmul.f32 0.044715, %v982_v35  ;;  %v987_v45 = vmul.f32 0.5, %v982_v35 }
 0x761   : > { %v984_v38 = vpop.f32.mrf.mxu0 }
 0x762   : > { %v989_v39 = vmul.f32 %v988_v37, %v982_v35 }
 0x763   : > { %v1343_v40 = vpop.f32.mrf.mxu0 }
 0x764   : > { %v990_v41 = vmul.f32 %v989_v39, %v982_v35 }
 0x766   : > { %v991_v42 = vadd.f32 %v990_v41, %v982_v35 }
 0x768   : > { %v992_v43 = vmul.f32 0.7978846, %v991_v42 }
 0x76a   : > { %1424 = vtanh.f32 %v992_v43 }
 0x777   : > { %v1425_v44 = vpop.eup %1424 }
 0x778   : > { %v994_v46 = vadd.f32 1.0, %v1425_v44 }
 0x77a   : > { %v995_v1 = vmul.f32 %v994_v46, %v987_v45 }
 0x77c   : > { %v996_v47 = vpack.c.bf16 %v995_v1, %v995_v1 }
 0x77e   : > { %1353 = vmatmul.mubr.msk.bf16.vlgmr.msra.gmra.mxu1 %vm1036_vm5, %v996_v47 }
 0x83e   : > { %v1074_v49 = vpop.f32.mrf.mxu1 }
 0x83f   : > { %v1075_v50 = vadd.f32 %v1262_v48, %v1074_v49 }
 0x840   : > { %v1354_v51 = vpop.f32.mrf.mxu1 }
 0x841   : > { %v1080_v52 = vadd.f32 %v1075_v50, %v919_v27 }
 0x842   : > { %v1077_v53 = vpop.f32.mrf.mxu1 }
 0x843   : > { %v1083_v54 = vsel %vm540_vm1, %v1080_v52, 0.0 }
 0x844   : > { %1084 = vadd.xlane.f32.xlu0 %v1083_v54  ;;  %v1355_v55 = vpop.f32.mrf.mxu1 }
 0x8cd   : > { %v1085_v56 = vpop.xlane.xlu0 %1084 }
 0x8ce   : > { %v1086_v57 = vmul.f32 0.03125, %v1085_v56 }
 0x8d0   : > { %v1087_v58 = vsub.f32 %v1080_v52, %v1086_v57 }
 0x8d2   : > { %v1088_v59 = vmul.f32 %v1087_v58, %v1087_v58 }
 0x8d4   : > { %v1089_v60 = vsel %vm540_vm1, %v1088_v59, 0.0 }
 0x8d5   : > { %1090 = vadd.xlane.f32.xlu0 %v1089_v60 }
 0x95e   : > { %v1091_v61 = vpop.xlane.xlu0 %1090 }
 0x95f   : > { %v1092_v62 = vmul.f32 0.03125, %v1091_v61 }
 0x961   : > { %v1093_v63 = vadd.f32 1e-12, %v1092_v62 }
 0x963   : > { %1426 = vrsqrt.f32 %v1093_v63 }
 0x970   : > { %v1427_v0 = vpop.eup %1426 }
 0x971   : > { %v1095_v4 = vmul.f32 %v1427_v0, %v1087_v58 }
 0x973   : > { %v1102_v6 = vmul.f32 %v1268_v2, %v1095_v4 }
 0x975   : > { %v1109_v7 = vadd.f32 %v1269_v5, %v1102_v6 }
 0x977   : > { %v1111_v8 = vsel %vm540_vm1, %v1109_v7, 0.0  ;;  %1110 = vst.msk [vmem:[%s497_s1] sm:$0xff] %vm540_vm1, %v1109_v7 }
 0x978   : > { %v1112_v9 = vrot.slane %v1111_v8, 4 }
 0x97a   : > { %v1113_v10 = vadd.f32 %v1112_v9, %v1111_v8 }
 0x97c   : > { %v1114_v11 = vrot.slane %v1113_v10, 2 }
 0x97e   : > { %v1115_v12 = vadd.f32 %v1114_v11, %v1113_v10 }
 0x97f   : > { %1441 = shalt.err (!%p1438_p3)
}
 0x980   : > { %s1442_s22 = scalar_lea.hbm %s1145_s4, 128  ;;  %s1446_s26 = scalar_lea.hbm %s1802_s14, 256 }
 0x981   : > { %p1443_p4 = scmp.ne.s32.totalorder %s1145_s4, %s1442_s22  ;;  %p1447_p9 = scmp.lt.s32.totalorder %s1145_s4, %s1802_s14 }
 0x982   : > { %p1448_p10 = scmp.lt.s32.totalorder %s1446_s26, %s1442_s22 }
 0x983   : > { %p1444_p7 = pnand %p1443_p4, %p1618_p5 }
 0x984   : > { %p1449_p11 = por %p1448_p10, %p1447_p9 }
 0x985   : > { %p1445_p8 = pneg %p1444_p7 }
 0x987   : > { %p1450_p12 = pnand %p1449_p11, %p1445_p8 }
 0x989   : > { %1453 = shalt.err (!%p1450_p12)
}
 0x98a   : > { %1356 = dma.vmem_to_hbm [thread:$0]  (%p1618_p5), %s1148_s3, 128, %s1145_s4, %s1131_s23   ;;  %v1116_v13 = vrot.slane %v1115_v12, 1  ;;  %vm1128_vm6 = vcmask 516096  }
 0x98b   : > { %s1499_s5 = smov 32   ;;  %s512_s17 = scalar_lea.vmem %s1803_s15, %s1643_s25 }
 0x98c   : > { %v1117_v14 = vadd.f32 %v1116_v13, %v1115_v12 }
 0x98e   : > { %v1119_v15 = vmul.f32 0.125, %v1117_v14 }
 0x990   : > { %v1122_v16 = vmul.f32 %v1119_v15, %v1109_v7  ;;  %v1120_v17 = vsub.f32 %v1109_v7, %v1119_v15 }
 0x992   : > { %1124 = vrot.lane.b32.xlu1 %v1122_v16, %s1499_s5  ;;  %v1121_v18 = vand.u32 2147483647, %v1120_v17 }
 0xa04   : > { %v1125_v3 = vpop.permute.xlu1 %1124 }
 0xa05   : > { %v1127_v19 = vsel %vm540_vm1, %v1121_v18, %v1125_v3 }
 0xa06   : > { %1129 = vst.msk [vmem:[%s512_s17] sm:$0x1] %vm1128_vm6, %v1127_v19 }
 0xa07 PF: > { %p1362_p5 = scmp.ge.s32.totalorder %s1488_s21, 2  ;;  %s1162_s3 = sand.u32 1, %s1476_s18  }
 0xa08   : > { %s1163_s4 = scalar_lea.sflag [#allocation3], %s1162_s3 }
 0xa09   : > { %p1359_p13 = pnand %p1362_p5, %p1622_p6 }
 0xa0b   : > { %p1360_p0 = pneg %p1359_p13 }
 0xa0d   : > { %1471 = dma.done.wait (%p1360_p0), %s1163_s4, 128  }
 0xa0e   : > { %1473 = vsyncadd (%p1360_p0), %s1163_s4, 4294967168  ;;  %p26_p1 = scmp.ge.s32.totalorder %s1605_s24, 4   ;;  %s1820_s18 = smov %s1480_s19 }
 0xa0f   : > { %s1821_s19 = smov %s1484_s20  ;;  %s1822_s20 = smov %s1616_s27 }
 0xa10   : > { %s1823_s21 = smov %s1605_s24  ;;  %28 = sbr.rel (!%p26_p1) target bundleno = 11 (0xb), region = 126 }
 0xa15   :  { %1174 = vsyncpa [#allocation3], 1 }
 0xa16   :  { %1176 = vsyncpa [#allocation3 + $0x1], 1 }

// kernel: _lambda_.5
= control target key start
LH: loop header
LB: loop body
LE: loop exit
PB: predicated region body
PF: predicated region fallthrough
CT: control target
= control target key end

     0   :  { %s1798_s0 = inlined_call_operand.vmem [shape: f32[2,8,32], index: 0, kind: input, shape index: {}]   ;;  %s1799_s1 = inlined_call_operand.vmem [shape: f32[2,1,8], index: 1, kind: input, shape index: {}]   ;;  %s1800_s2 = inlined_call_operand.vmem [shape: bf16[32,96], index: 2, kind: input, shape index: {}]   ;;  %s1801_s3 = inlined_call_operand.vmem [shape: f32[1,96], index: 3, kind: input, shape index: {}]   ;;  %s1802_s4 = inlined_call_operand.vmem [shape: bf16[32,32], index: 4, kind: input, shape index: {}]   ;;  %s1803_s5 = inlined_call_operand.vmem [shape: f32[1,32], index: 5, kind: input, shape index: {}, may-alias: {5,7,11,13}]   ;;  %s1804_s6 = inlined_call_operand.vmem [shape: f32[1,32], index: 6, kind: input, shape index: {}, may-alias: {6,12}]   ;;  %s1805_s7 = inlined_call_operand.vmem [shape: f32[1,32], index: 7, kind: input, shape index: {}, may-alias: {5,7,11,13}]   ;;  %s1806_s8 = inlined_call_operand.vmem [shape: bf16[32,64], index: 8, kind: input, shape index: {}]   ;;  %s1807_s9 = inlined_call_operand.vmem [shape: f32[1,64], index: 9, kind: input, shape index: {}]   ;;  %s1808_s10 = inlined_call_operand.vmem [shape: bf16[64,32], index: 10, kind: input, shape index: {}]   ;;  %s1809_s11 = inlined_call_operand.vmem [shape: f32[1,32], index: 11, kind: input, shape index: {}, may-alias: {5,7,11,13}]   ;;  %s1810_s12 = inlined_call_operand.vmem [shape: f32[1,32], index: 12, kind: input, shape index: {}, may-alias: {6,12}]   ;;  %s1811_s13 = inlined_call_operand.vmem [shape: f32[1,32], index: 13, kind: input, shape index: {}, may-alias: {5,7,11,13}]   ;;  %s1812_s14 = inlined_call_operand.vmem [shape: f32[2,8,32], index: 14, kind: output, shape index: {0}]   ;;  %s1813_s15 = inlined_call_operand.hbm [shape: f32[2,1,64], index: 15, kind: output, shape index: {1}]  }
   0x1   :  { %1815 = sst [smem:[#allocation5_spill]] %s1798_s0 }
   0x2   :  { %1816 = sst [smem:[#allocation6_spill]] %s1799_s1 }
   0x3   :  { %1817 = sst [smem:[#allocation7_spill]] %s1800_s2 }
   0x4   :  { %1818 = sst [smem:[#allocation8_spill]] %s1801_s3 }
   0x5   :  { %1819 = sst [smem:[#allocation9_spill]] %s1802_s4 }
   0x6   :  { %21 = vsyncpa [#allocation3], 0 }
   0x7   :  { %23 = vsyncpa [#allocation3 + $0x1], 0  ;;  %s1581_s18 = smov 0   ;;  %s1583_s19 = smov 0  }
   0x8   :  { %s1585_s20 = smov 0   ;;  %s1587_s21 = smov 0  }
   0x9 LB: > { %s1602_s22 = sadd.s32 4294967295, %s1489_s21   ;;  %s1239_s23 = sadd.s32 4294967294, %s1489_s21   ;;  %s1489_s21 = sphi %s1587_s21, %s1831_s21   ;;  %s1485_s20 = sphi %s1585_s20, %s1830_s20   ;;  %s1481_s19 = sphi %s1583_s19, %s1829_s19   ;;  %s1477_s18 = sphi %s1581_s18, %s1828_s18  }
   0xa   : > { %s1606_s24 = sadd.s32 1, %s1489_s21   ;;  %s366_s25 = sadd.s32 1, %s1485_s20 }
   0xb   : > { %s363_s26 = ssub.s32 %s1489_s21, %s1606_s24  ;;  %p376_p0 = scmp.ne.s32.totalorder %s1485_s20, %s1481_s19 }
   0xc   : > { %p364_p1 = scmp.eq.s32.totalorder %s363_s26, 0  ;;  %p377_p2 = scmp.eq.s32.totalorder %s1602_s22, 1 }
   0xd   : > { %p382_p3 = scmp.ne.s32.totalorder %s1481_s19, %s1477_s18  ;;  %p383_p4 = scmp.eq.s32.totalorder %s1239_s23, 1 }
   0xe   : > { %s1617_s27 = scalar_select %p364_p1, %s1485_s20, %s366_s25  }
   0xf   : > { %p1619_p5 = por %p377_p2, %p376_p0  ;;  %p1623_p6 = por %p383_p4, %p382_p3 }
  0x10   : > { %p1242_p7 = scmp.ge.s32.totalorder %s1489_s21, 1  ;;  %p450_p8 = scmp.lt.s32.totalorder %s1489_s21, 3 }
  0x12   : > { %p451_p9 = pnand %p1242_p7, %p450_p8 }
  0x13   : > { %s1822_s2 = sld [smem:[#allocation7_spill]] (!%p451_p9)  ;;  %p503_p10 = scmp.lt.s32.totalorder (!%p451_p9), %s1602_s22, 1 }
  0x14   : > { %454 = sbr.rel (%p451_p9) target bundleno = 2567 (0xa07), region = 76  ;;  %s1823_s0 = sld [smem:[#allocation5_spill]] (!%p451_p9) }
  0x15   : > { %s1824_s3 = sld [smem:[#allocation8_spill]] (!%p451_p9)  ;;  %s1493_s30 = smov (!%p451_p9), 112  }
  0x16   : > { %s1494_s16 = smov (!%p451_p9), 96   ;;  %s1825_s1 = sld [smem:[#allocation6_spill]] (!%p451_p9) }
  0x17   : > { %s1826_s4 = sld [smem:[#allocation9_spill]] (!%p451_p9)  ;;  %s1272_s23 = sshll.u32 (!%p451_p9), %s1602_s22, 4 }
  0x19   : > { %v1405_v0 = vld [vmem:[%s1822_s2 + $0x8] sm:$0xff]   ;;  %v1491_v1 = vmov 0.0   ;;  %v1406_v2 = vld [vmem:[%s1822_s2] sm:$0xff]   ;;  %vm1492_vm0 = vmmov 0   ;;  %s1644_s25 = scalar_select %p503_p10, %s1602_s22, 1  ;;  %vm541_vm1 = vcmask 261120  }
  0x1a   : > { %1297 = vmatprep.subr.bf16.mxu0 %v1491_v1  ;;  %1305 = vmatprep.subr.bf16.mxu1 %v1491_v1  ;;  %vm589_vm2 = vcmask 130048   ;;  %vm644_vm3 = vcmask 64512   ;;  %vm662_vm4 = vcmask 1043456   ;;  %vm1037_vm5 = vcmask 523264   ;;  %s1500_s22 = smov [#allocation2]  }
  0x1b   : > { %1298 = vmatpush3.bf16.msra.mxu0 %v1405_v0  ;;  %1301 = vmatprep.mubr.msk.bf16.mxu0 %vm1492_vm0, %v1491_v1  ;;  %s1814_s26 = sshll.u32 %s1644_s25, 3  ;;  %v1245_v5 = vld [vmem:[%s1824_s3] ss:$0 sm:$0xff]  ;;  %vm1129_vm6 = vcmask 516096  }
  0x1c   : > { %1299 = vmatprep.subr.bf16.mxu0 %v1491_v1  ;;  %1307 = vmatprep.mubr.msk.bf16.mxu1 %vm1492_vm0, %v1491_v1  ;;  %s506_s17 = scalar_lea.vmem %s1823_s0, %s1814_s26  ;;  %s501_s26 = sand.u32 1, %s1481_s19  }
  0x1d   : > { %v1653_v3 = vld [vmem:[%s506_s17] sm:$0xff]  ;;  %s1495_s17 = smov 80   ;;  %v1407_v54 = vld [vmem:[%s1826_s4 + $0x8] sm:$0xff]  }
  0x1e   : > { %v517_v4 = vpack.c.bf16 %v1653_v3, %v1653_v3  ;;  %v1408_v55 = vld [vmem:[%s1826_s4] sm:$0xff]  }
  0x1f   : > { %1300 = vmatpush3.bf16.msra.mxu0 %v1406_v2 }
  0x20   : > { %1311 = vmatprep.subr.bf16.mxu0 %v1491_v1 }
  0x22   : > { %1302 = vmatmul.mubr.msk.bf16.vlgmr.msra.gmra.mxu0 %vm541_vm1, %v517_v4 }
  0x23   : > { %1313 = vmatprep.mubr.msk.bf16.mxu0 %vm1492_vm0, %v1491_v1 }
  0xe2   : > { %v579_v6 = vpop.f32.mrf.mxu0 }
  0xe3   : > { %v580_v7 = vadd.f32 %v1245_v5, %v579_v6  ;;  %v1254_v5 = vld [vmem:[%s1803_s5] ss:$0 sm:$0xff] }
  0xe4   : > { %v1303_v8 = vpop.f32.mrf.mxu0 }
  0xe5   : > { %v585_v9 = vpack.c.bf16 %v580_v7, %v580_v7 }
  0xe6   : > { %v582_v10 = vpop.f32.mrf.mxu0 }
  0xe7   : > { %706 = vrot.lane.b32.xlu1 %v585_v9, %s1493_s30  ;;  %587 = vrot.lane.b32.xlu0 %v585_v9, %s1494_s16  ;;  %s509_s30 = scalar_lea.vmem %s1825_s1, %s1644_s25  ;;  %s1496_s16 = smov 64  }
  0xe8   : > { %v1304_v11 = vpop.f32.mrf.mxu0  ;;  %v1250_v18 = vld [vmem:[%s509_s30] ss:$0 sm:$0xff]  ;;  %s502_s30 = scalar_lea.vmem [#allocation2], %s501_s26  ;;  %s1762_s1 = scalar_lea.hbm %s1813_s15, %s1272_s23 }
  0xeb   : > { %708 = vrot.lane.b32.xlu0 %v585_v9, %s1495_s17  ;;  %s1497_s17 = smov 48  }
 0x159   : > { %v588_v12 = vpop.permute.xlu0 %587  ;;  %v707_v16 = vpop.permute.xlu1 %706 }
 0x15a   : > { %v594_v13 = vsel %vm589_vm2, %v588_v12, 0 }
 0x15b   : > { %1306 = vmatpush3.bf16.xpose.msra.mxu1 %v594_v13 }
 0x15c   : > { %1317 = vmatprep.subr.bf16.mxu1 %v1491_v1 }
 0x15d   : > { %v709_v14 = vpop.permute.xlu0 %708 }
 0x15e   : > { %v714_v15 = vsel %vm589_vm2, %v709_v14, 0 }
 0x162   : > { %1308 = vmatmul.mubr.msk.bf16.vlgmr.msra.gmra.mxu1 %vm589_vm2, %v585_v9 }
 0x163   : > { %1318 = vmatpush3.bf16.xpose.msra.mxu1 %v714_v15  ;;  %1319 = vmatprep.mubr.msk.bf16.mxu1 %vm1492_vm0, %v1491_v1 }
 0x164   : > { %1329 = vmatprep.subr.bf16.mxu1 %v1491_v1 }
 0x16a   : > { %1320 = vmatmul.mubr.msk.bf16.vlgmr.msra.gmra.mxu1 %vm589_vm2, %v707_v16 }
 0x16b   : > { %1333 = vmatprep.mubr.msk.bf16.mxu1 %vm1492_vm0, %v1491_v1  ;;  %1330 = vmatpush3.bf16.msra.mxu1 %v1407_v54 }
 0x16c   : > { %1331 = vmatprep.subr.bf16.mxu1 %v1491_v1 }
 0x16f   : > { %1332 = vmatpush3.bf16.msra.mxu1 %v1408_v55 }
 0x170   : > { %1345 = vmatprep.subr.bf16.mxu1 %v1491_v1 }
 0x222   : > { %v630_v17 = vpop.f32.mrf.mxu1 }
 0x223   : > { %v636_v19 = vmul.f32 0.25, %v630_v17 }
 0x224   : > { %v1309_v20 = vpop.f32.mrf.mxu1 }
 0x225   : > { %v643_v21 = vadd.f32 %v1250_v18, %v636_v19 }
 0x226   : > { %v633_v22 = vpop.f32.mrf.mxu1 }
 0x227   : > { %v645_v23 = vsel %vm644_vm3, %v643_v21, -inf }
 0x228   : > { %646 = vmax.xlane.f32.xlu1 %v645_v23  ;;  %v1310_v24 = vpop.f32.mrf.mxu1  ;;  %v1258_v23 = vld [vmem:[%s1804_s6] ss:$0 sm:$0xff] }
 0x22a   : > { %v750_v25 = vpop.f32.mrf.mxu1 }
 0x22b   : > { %v756_v26 = vmul.f32 0.25, %v750_v25  ;;  %v1259_v25 = vld [vmem:[%s1805_s7] ss:$0 sm:$0xff] }
 0x22c   : > { %v1321_v27 = vpop.f32.mrf.mxu1 }
 0x22d   : > { %v757_v28 = vadd.f32 %v1250_v18, %v756_v26  ;;  %v1409_v18 = vld [vmem:[%s1806_s8 + $0x8] sm:$0xff]  }
 0x22e   : > { %v753_v29 = vpop.f32.mrf.mxu1 }
 0x22f   : > { %v758_v30 = vsel %vm644_vm3, %v757_v28, -inf  ;;  %v1411_v29 = vld [vmem:[%s1808_s10 + $0x18] sm:$0xff]  }
 0x230   : > { %759 = vmax.xlane.f32.xlu0 %v758_v30  ;;  %v1322_v31 = vpop.f32.mrf.mxu1  ;;  %v1412_v30 = vld [vmem:[%s1808_s10 + $0x10] sm:$0xff]  }
 0x231   : > { %v1413_v31 = vld [vmem:[%s1808_s10 + $0x8] sm:$0xff]  }
 0x2b1   : > { %v647_v32 = vpop.xlane.xlu1 %646 }
 0x2b2   : > { %v648_v33 = vsub.f32 %v643_v21, %v647_v32  ;;  %v1414_v32 = vld [vmem:[%s1808_s10] sm:$0xff]  }
 0x2b4   : > { %v649_v34 = vmul.f32 1.442695, %v648_v33  ;;  %v1260_v33 = vld [vmem:[%s1807_s9] ss:$0 sm:$0xff] }
 0x2b6   : > { %1415 = vpow2.f32 %v649_v34 }
 0x2b9   : > { %v760_v35 = vpop.xlane.xlu0 %759 }
 0x2ba   : > { %v761_v36 = vsub.f32 %v757_v28, %v760_v35 }
 0x2bc   : > { %v762_v37 = vmul.f32 1.442695, %v761_v36 }
 0x2be   : > { %1417 = vpow2.f32 %v762_v37 }
 0x2c3   : > { %v1416_v38 = vpop.eup %1415 }
 0x2c4   : > { %v651_v39 = vsel %vm644_vm3, %v1416_v38, 0.0 }
 0x2c5   : > { %652 = vadd.xlane.f32.xlu0 %v651_v39 }
 0x2cb   : > { %v1418_v40 = vpop.eup %1417 }
 0x2cc   : > { %v764_v41 = vsel %vm644_vm3, %v1418_v40, 0.0 }
 0x2cd   : > { %765 = vadd.xlane.f32.xlu1 %v764_v41 }
 0x2db   : > { %657 = vrot.lane.b32.xlu0 %v585_v9, %s1496_s16  ;;  %s1151_s16 = sshll.u32 %s502_s30, 4  ;;  %s1152_s16 = int_to_ptr.vmem [resolvable:$true] %s1151_s16 }
 0x2dc   : > { %s1429_s3 = scalar_lea.vmem %s1152_s16, 16 }
 0x2dd   : > { %p1430_p11 = scmp.ne.s32.totalorder %s1152_s16, %s1429_s3 }
 0x2de   : > { %770 = vrot.lane.b32.xlu1 %v585_v9, %s1497_s17  ;;  %s1498_s17 = smov 16  }
 0x2df   : > { %p1431_p12 = pnand %p1430_p11, %p1619_p5 }
 0x2e1   : > { %p1432_p13 = pneg %p1431_p12 }
 0x34e   : > { %v653_v42 = vpop.xlane.xlu0 %652 }
 0x34f   : > { %1419 = vrcp.f32 %v653_v42 }
 0x352   : > { %v658_v43 = vpop.permute.xlu0 %657 }
 0x353   : > { %v664_v44 = vsel %vm662_vm4, %v658_v43, 0 }
 0x354   : > { %1312 = vmatpush3.bf16.msra.mxu0 %v664_v44 }
 0x355   : > { %1323 = vmatprep.subr.bf16.mxu0 %v1491_v1 }
 0x356   : > { %v766_v45 = vpop.xlane.xlu1 %765 }
 0x357   : > { %1421 = vrcp.f32 %v766_v45 }
 0x35a   : > { %v771_v48 = vpop.permute.xlu1 %770 }
 0x35b   : > { %v776_v50 = vsel %vm662_vm4, %v771_v48, 0  ;;  %v1264_v48 = vld [vmem:[%s1809_s11] ss:$0 sm:$0xff] }
 0x35c   : > { %v1420_v46 = vpop.eup %1419 }
 0x35d   : > { %v655_v47 = vmul.f32 %v1420_v46, %v1416_v38 }
 0x35f   : > { %v656_v49 = vpack.c.bf16 %v655_v47, %v655_v47 }
 0x361   : > { %1314 = vmatmul.mubr.msk.bf16.vlgmr.msra.gmra.mxu0 %vm644_vm3, %v656_v49 }
 0x362   : > { %1324 = vmatpush3.bf16.msra.mxu0 %v776_v50  ;;  %1325 = vmatprep.mubr.msk.bf16.mxu0 %vm1492_vm0, %v1491_v1 }
 0x363   : > { %1337 = vmatprep.subr.bf16.mxu0 %v1491_v1 }
 0x364   : > { %v1422_v51 = vpop.eup %1421 }
 0x365   : > { %v768_v52 = vmul.f32 %v1422_v51, %v1418_v40 }
 0x367   : > { %v769_v53 = vpack.c.bf16 %v768_v52, %v768_v52 }
 0x369   : > { %1326 = vmatmul.mubr.msk.bf16.vlgmr.msra.gmra.mxu0 %vm644_vm3, %v769_v53 }
 0x36a   : > { %1341 = vmatprep.mubr.msk.bf16.mxu0 %vm1492_vm0, %v1491_v1  ;;  %1338 = vmatpush3.bf16.msra.mxu0 %v1409_v18 }
 0x36b   : > { %1339 = vmatprep.subr.bf16.mxu0 %v1491_v1 }
 0x421   : > { %v700_v56 = vpop.f32.mrf.mxu0 }
 0x423   : > { %v1315_v57 = vpop.f32.mrf.mxu0 }
 0x425   : > { %v703_v58 = vpop.f32.mrf.mxu0 }
 0x427   : > { %v1316_v59 = vpop.f32.mrf.mxu0 }
 0x429   : > { %v812_v60 = vpop.f32.mrf.mxu0 }
 0x42a   : > { %819 = vrot.lane.b32.xlu1 %v812_v60, %s1498_s17  ;;  %s1827_s17 = sshll.u32 %s1644_s25, 3  ;;  %s1499_s25 = smov 32  }
 0x42b   : > { %v1327_v61 = vpop.f32.mrf.mxu0  ;;  %s513_s2 = scalar_lea.vmem %s1812_s14, %s1827_s17 }
 0x42d   : > { %v815_v62 = vpop.f32.mrf.mxu0 }
 0x42f   : > { %v1328_v63 = vpop.f32.mrf.mxu0 }
 0x49c   : > { %v820_v0 = vpop.permute.xlu1 %819 }
 0x49d   : > { %v822_v2 = vsel %vm589_vm2, %v700_v56, %v820_v0 }
 0x49e   : > { %v823_v4 = vpack.c.bf16 %v822_v2, %v822_v2  ;;  %v1270_v2 = vld [vmem:[%s1810_s12] ss:$0 sm:$0xff] }
 0x4a0   : > { %1334 = vmatmul.mubr.msk.bf16.vlgmr.msra.gmra.mxu1 %vm541_vm1, %v823_v4 }
 0x4a1   : > { %1353 = vmatprep.mubr.msk.bf16.mxu1 %vm1492_vm0, %v1491_v1  ;;  %1346 = vmatpush3.bf16.msra.mxu1 %v1411_v29 }
 0x4a2   : > { %1347 = vmatprep.subr.bf16.mxu1 %v1491_v1 }
 0x4a5   : > { %1348 = vmatpush3.bf16.msra.mxu1 %v1412_v30 }
 0x4a6   : > { %1349 = vmatprep.subr.bf16.mxu1 %v1491_v1 }
 0x4a9   : > { %1350 = vmatpush3.bf16.msra.mxu1 %v1413_v31 }
 0x4aa   : > { %1351 = vmatprep.subr.bf16.mxu1 %v1491_v1 }
 0x4ad   : > { %1352 = vmatpush3.bf16.msra.mxu1 %v1414_v32 }
 0x560   : > { %v884_v6 = vpop.f32.mrf.mxu1 }
 0x561   : > { %v885_v7 = vadd.f32 %v1254_v5, %v884_v6  ;;  %v1271_v5 = vld [vmem:[%s1811_s13] ss:$0 sm:$0xff] }
 0x562   : > { %v1335_v8 = vpop.f32.mrf.mxu1 }
 0x563   : > { %v890_v9 = vadd.f32 %v885_v7, %v1653_v3  ;;  %v1410_v3 = vld [vmem:[%s1806_s8] sm:$0xff]  }
 0x564   : > { %v887_v10 = vpop.f32.mrf.mxu1  ;;  %1340 = vmatpush3.bf16.msra.mxu0 %v1410_v3 }
 0x565   : > { %v893_v11 = vsel %vm541_vm1, %v890_v9, 0.0 }
 0x566   : > { %894 = vadd.xlane.f32.xlu0 %v893_v11  ;;  %v1336_v12 = vpop.f32.mrf.mxu1 }
 0x5ef   : > { %v895_v13 = vpop.xlane.xlu0 %894 }
 0x5f0   : > { %v897_v14 = vmul.f32 0.03125, %v895_v13 }
 0x5f2   : > { %v898_v15 = vsub.f32 %v890_v9, %v897_v14 }
 0x5f4   : > { %v899_v16 = vmul.f32 %v898_v15, %v898_v15 }
 0x5f6   : > { %v900_v17 = vsel %vm541_vm1, %v899_v16, 0.0 }
 0x5f7   : > { %901 = vadd.xlane.f32.xlu1 %v900_v17 }
 0x680   : > { %v902_v19 = vpop.xlane.xlu1 %901 }
 0x681   : > { %v903_v20 = vmul.f32 0.03125, %v902_v19 }
 0x683   : > { %v904_v21 = vadd.f32 1e-12, %v903_v20 }
 0x685   : > { %1423 = vrsqrt.f32 %v904_v21 }
 0x692   : > { %v1424_v22 = vpop.eup %1423 }
 0x693   : > { %v906_v24 = vmul.f32 %v1424_v22, %v898_v15 }
 0x695   : > { %v913_v26 = vmul.f32 %v1258_v23, %v906_v24 }
 0x697   : > { %v920_v27 = vadd.f32 %v1259_v25, %v913_v26 }
 0x699   : > { %v921_v28 = vpack.c.bf16 %v920_v27, %v920_v27 }
 0x69b   : > { %1342 = vmatmul.mubr.msk.bf16.vlgmr.msra.gmra.mxu0 %vm541_vm1, %v921_v28 }
 0x75b   : > { %v982_v34 = vpop.f32.mrf.mxu0 }
 0x75c   : > { %v983_v35 = vadd.f32 %v1260_v33, %v982_v34 }
 0x75d   : > { %v1343_v36 = vpop.f32.mrf.mxu0 }
 0x75e   : > { %v989_v37 = vmul.f32 0.044715, %v983_v35  ;;  %v988_v45 = vmul.f32 0.5, %v983_v35 }
 0x75f   : > { %v985_v38 = vpop.f32.mrf.mxu0 }
 0x760   : > { %v990_v39 = vmul.f32 %v989_v37, %v983_v35 }
 0x761   : > { %v1344_v40 = vpop.f32.mrf.mxu0 }
 0x762   : > { %v991_v41 = vmul.f32 %v990_v39, %v983_v35 }
 0x764   : > { %v992_v42 = vadd.f32 %v991_v41, %v983_v35 }
 0x766   : > { %v993_v43 = vmul.f32 0.7978846, %v992_v42 }
 0x768   : > { %1425 = vtanh.f32 %v993_v43 }
 0x775   : > { %v1426_v44 = vpop.eup %1425 }
 0x776   : > { %v995_v46 = vadd.f32 1.0, %v1426_v44 }
 0x778   : > { %v996_v1 = vmul.f32 %v995_v46, %v988_v45 }
 0x77a   : > { %v997_v47 = vpack.c.bf16 %v996_v1, %v996_v1 }
 0x77c   : > { %1354 = vmatmul.mubr.msk.bf16.vlgmr.msra.gmra.mxu1 %vm1037_vm5, %v997_v47 }
 0x83c   : > { %v1075_v49 = vpop.f32.mrf.mxu1 }
 0x83d   : > { %v1076_v50 = vadd.f32 %v1264_v48, %v1075_v49 }
 0x83e   : > { %v1355_v51 = vpop.f32.mrf.mxu1 }
 0x83f   : > { %v1081_v52 = vadd.f32 %v1076_v50, %v920_v27 }
 0x840   : > { %v1078_v53 = vpop.f32.mrf.mxu1 }
 0x841   : > { %v1084_v54 = vsel %vm541_vm1, %v1081_v52, 0.0 }
 0x842   : > { %1085 = vadd.xlane.f32.xlu0 %v1084_v54  ;;  %v1356_v55 = vpop.f32.mrf.mxu1 }
 0x8cb   : > { %v1086_v56 = vpop.xlane.xlu0 %1085 }
 0x8cc   : > { %v1087_v57 = vmul.f32 0.03125, %v1086_v56 }
 0x8ce   : > { %v1088_v58 = vsub.f32 %v1081_v52, %v1087_v57 }
 0x8d0   : > { %v1089_v59 = vmul.f32 %v1088_v58, %v1088_v58 }
 0x8d2   : > { %v1090_v60 = vsel %vm541_vm1, %v1089_v59, 0.0 }
 0x8d3   : > { %1091 = vadd.xlane.f32.xlu0 %v1090_v60 }
 0x95c   : > { %v1092_v61 = vpop.xlane.xlu0 %1091 }
 0x95d   : > { %v1093_v62 = vmul.f32 0.03125, %v1092_v61 }
 0x95f   : > { %v1094_v63 = vadd.f32 1e-12, %v1093_v62 }
 0x961   : > { %1427 = vrsqrt.f32 %v1094_v63 }
 0x96e   : > { %v1428_v0 = vpop.eup %1427 }
 0x96f   : > { %v1096_v4 = vmul.f32 %v1428_v0, %v1088_v58 }
 0x971   : > { %v1103_v6 = vmul.f32 %v1270_v2, %v1096_v4 }
 0x973   : > { %v1110_v7 = vadd.f32 %v1271_v5, %v1103_v6 }
 0x975   : > { %v1112_v8 = vsel %vm541_vm1, %v1110_v7, 0.0  ;;  %1111 = vst.msk [vmem:[%s513_s2] sm:$0xff] %vm541_vm1, %v1110_v7  ;;  %s1136_s2 = scalar_lea.sflag [#allocation3], %s501_s26 }
 0x976   : > { %v1113_v9 = vrot.slane %v1112_v8, 4 }
 0x978   : > { %v1114_v10 = vadd.f32 %v1113_v9, %v1112_v8 }
 0x97a   : > { %v1115_v11 = vrot.slane %v1114_v10, 2 }
 0x97c   : > { %v1116_v12 = vadd.f32 %v1115_v11, %v1114_v10 }
 0x97e   : > { %v1117_v13 = vrot.slane %v1116_v12, 1 }
 0x980   : > { %v1118_v14 = vadd.f32 %v1117_v13, %v1116_v12 }
 0x982   : > { %v1120_v15 = vmul.f32 0.125, %v1118_v14 }
 0x984   : > { %v1123_v16 = vmul.f32 %v1120_v15, %v1110_v7  ;;  %v1121_v17 = vsub.f32 %v1110_v7, %v1120_v15 }
 0x986   : > { %1125 = vrot.lane.b32.xlu1 %v1123_v16, %s1499_s25  ;;  %v1122_v18 = vand.u32 2147483647, %v1121_v17  ;;  %s1433_s25 = sshll.u32 %s1500_s22, 4  ;;  %s1434_s25 = int_to_ptr.vmem [resolvable:$false] %s1433_s25 }
 0x987   : > { %s1435_s4 = scalar_lea.vmem %s1434_s25, 32  ;;  %p1436_p0 = scmp.lt.s32.totalorder %s1152_s16, %s1434_s25 }
 0x988   : > { %p1437_p1 = scmp.lt.s32.totalorder %s1435_s4, %s1429_s3 }
 0x98a   : > { %p1438_p2 = por %p1437_p1, %p1436_p0 }
 0x98c   : > { %p1439_p3 = pnand %p1438_p2, %p1432_p13 }
 0x9f8   : > { %v1126_v3 = vpop.permute.xlu1 %1125 }
 0x9f9   : > { %v1128_v19 = vsel %vm541_vm1, %v1122_v18, %v1126_v3 }
 0x9fa   : > { %1130 = vst.msk [vmem:[%s502_s30] sm:$0x1] %vm1129_vm6, %v1128_v19 }
 0x9fb   : > { %1442 = shalt.err (!%p1439_p3)
}
 0x9fc   : > { %s1443_s23 = scalar_lea.hbm %s1762_s1, 16  ;;  %s1447_s17 = scalar_lea.hbm %s1813_s15, 32 }
 0x9fd   : > { %p1444_p4 = scmp.ne.s32.totalorder %s1762_s1, %s1443_s23  ;;  %p1448_p9 = scmp.lt.s32.totalorder %s1762_s1, %s1813_s15 }
 0x9fe   : > { %p1449_p10 = scmp.lt.s32.totalorder %s1447_s17, %s1443_s23 }
 0x9ff   : > { %p1445_p7 = pnand %p1444_p4, %p1619_p5 }
 0xa00   : > { %p1450_p11 = por %p1449_p10, %p1448_p9 }
 0xa01   : > { %p1446_p8 = pneg %p1445_p7 }
 0xa03   : > { %p1451_p12 = pnand %p1450_p11, %p1446_p8 }
 0xa05   : > { %1454 = shalt.err (!%p1451_p12)
}
 0xa06   : > { %1357 = dma.vmem_to_hbm [thread:$0]  (%p1619_p5), %s1152_s16, 16, %s1762_s1, %s1136_s2  }
 0xa07 PF: > { %p1363_p13 = scmp.ge.s32.totalorder %s1489_s21, 2  ;;  %s1170_s3 = sand.u32 1, %s1477_s18  }
 0xa08   : > { %s1171_s4 = scalar_lea.sflag [#allocation3], %s1170_s3 }
 0xa09   : > { %p1360_p0 = pnand %p1363_p13, %p1623_p6 }
 0xa0b   : > { %p1361_p1 = pneg %p1360_p0 }
 0xa0d   : > { %1472 = dma.done.wait (%p1361_p1), %s1171_s4, 16  }
 0xa0e   : > { %1474 = vsyncadd (%p1361_p1), %s1171_s4, 4294967280  ;;  %p26_p2 = scmp.ge.s32.totalorder %s1606_s24, 4   ;;  %s1828_s18 = smov %s1481_s19 }
 0xa0f   : > { %s1829_s19 = smov %s1485_s20  ;;  %s1830_s20 = smov %s1617_s27 }
 0xa10   : > { %s1831_s21 = smov %s1606_s24  ;;  %28 = sbr.rel (!%p26_p2) target bundleno = 9 (0x9), region = 126 }
 0xa15   :  { %1175 = vsyncpa [#allocation3], 1 }
 0xa16   :  { %1177 = vsyncpa [#allocation3 + $0x1], 1 }

</bundles_post_ra>
